<compile_context>
chip_gen: v7x
topology: tpu7x:2x2x1
jax: 0.10.0
libtpu: 0.0.40
codegen_flags: <defaults>
</compile_context>

<pallas_src>
import functools

import jax
import jax.numpy as jnp
import numpy as np
from jax import lax
from jax.experimental import pallas as pl
from jax.experimental.pallas import tpu as pltpu


def _round_up(x, m):
    return (x + m - 1) // m * m


def _pick_row_tile(n, cap=512):
    """Largest row tile <= cap that divides n and is a multiple of 8."""
    if n <= cap:
        return n
    for tm in range(cap, 7, -8):
        if n % tm == 0:
            return tm
    return cap  # Pallas masks the ragged tail block.


# ----------------------------------------------------------------------------
# Kernel 1: fused input projection (fc1 + fc_h + Wih1 folded).
#   gates_x1 = feats @ Wf + hands @ Wh + b_fold      (rows = t*Bp + b)
# ----------------------------------------------------------------------------
def _input_proj_kernel(f_ref, h_ref, wf_ref, wh_ref, b_ref, o_ref):
    o_ref[...] = (
        jnp.dot(f_ref[...], wf_ref[...], preferred_element_type=jnp.float32)
        + jnp.dot(h_ref[...], wh_ref[...], preferred_element_type=jnp.float32)
        + b_ref[...]
    )


def input_proj(feats2d, hands2d, wf, wh, b):
    n, fin = feats2d.shape
    fh = hands2d.shape[1]
    fout = wf.shape[1]
    # Row-tile so the (rows, 2048) activations never blow scoped VMEM at
    # production sizes; weights stay resident (constant index map).
    tm = _pick_row_tile(n)
    return pl.pallas_call(
        _input_proj_kernel,
        out_shape=jax.ShapeDtypeStruct((n, fout), jnp.float32),
        grid=(pl.cdiv(n, tm),),
        in_specs=[
            pl.BlockSpec((tm, fin), lambda i: (i, 0)),
            pl.BlockSpec((tm, fh), lambda i: (i, 0)),
            pl.BlockSpec((fin, fout), lambda i: (0, 0)),
            pl.BlockSpec((fh, fout), lambda i: (0, 0)),
            pl.BlockSpec((1, fout), lambda i: (0, 0)),
        ],
        out_specs=pl.BlockSpec((tm, fout), lambda i: (i, 0)),
        compiler_params=pltpu.CompilerParams(dimension_semantics=("parallel",)),
    )(feats2d, hands2d, wf, wh, b)


# ----------------------------------------------------------------------------
# Kernel 2: two-layer LSTM recurrence + fc2 + argmax + cross-entropy, fused.
# Single grid step; time loop runs in-kernel over VMEM-resident data.
# ----------------------------------------------------------------------------
def _lstm_head_kernel(
    gx1_ref, len_ref, act_ref,
    whh1_ref, wih2_ref, whh2_ref, b2_ref, w2_ref, bfc2_ref,
    logits_ref, pred_ref, loss_ref,
    h1_all, gx2,
    *, t_len, bsz, hdim, ncls, b_real,
):
    f32 = jnp.float32
    lengths = len_ref[...]                                   # (Bp, 1) int32
    unroll = t_len <= 16

    def cell_gates(g, c_prev):
        i = jax.nn.sigmoid(g[:, 0:hdim])
        f = jax.nn.sigmoid(g[:, hdim:2 * hdim])
        gg = jnp.tanh(g[:, 2 * hdim:3 * hdim])
        o = jax.nn.sigmoid(g[:, 3 * hdim:4 * hdim])
        c_new = f * c_prev + i * gg
        h_new = o * jnp.tanh(c_new)
        return h_new, c_new

    zeros = jnp.zeros((bsz, hdim), f32)

    # ---- layer 1: input projection already hoisted into kernel 1; only the
    #      h_prev @ Whh matmul remains on the serial critical path.
    whh1 = whh1_ref[...]

    def body1(t, carry):
        h, c = carry
        row = pl.multiple_of(t * bsz, 8)
        m = lengths > t                                       # (Bp, 1) bool
        g = gx1_ref[pl.ds(row, bsz), :] + jnp.dot(h, whh1, preferred_element_type=f32)
        h_new, c_new = cell_gates(g, c)
        # packed-seq semantics: layer-2 input is zero at padded steps
        h1_all[pl.ds(row, bsz), :] = jnp.where(m, h_new, 0.0)
        return jnp.where(m, h_new, h), jnp.where(m, c_new, c)

    lax.fori_loop(0, t_len, body1, (zeros, zeros), unroll=unroll)

    # ---- layer 2 input projection (+ bias), batched over all timesteps.
    gx2[...] = (
        jnp.dot(h1_all[...], wih2_ref[...], preferred_element_type=f32) + b2_ref[...]
    )

    whh2 = whh2_ref[...]

    def body2(t, carry):
        h, c = carry
        row = pl.multiple_of(t * bsz, 8)
        m = lengths > t
        g = gx2[pl.ds(row, bsz), :] + jnp.dot(h, whh2, preferred_element_type=f32)
        h_new, c_new = cell_gates(g, c)
        return jnp.where(m, h_new, h), jnp.where(m, c_new, c)

    h2, _ = lax.fori_loop(0, t_len, body2, (zeros, zeros), unroll=unroll)

    # pad_packed_sequence(...)[:, -1, :]: sequences of max length carry their
    # final hidden state at t_max-1; shorter sequences are zero padding there.
    len_f = lengths.astype(f32)
    t_max = jnp.max(len_f, axis=0, keepdims=True)             # (1, 1)
    last = jnp.where(len_f >= t_max, h2, 0.0)                 # (Bp, H)

    # ---- fc2 + argmax + cross-entropy on the already-resident hidden state.
    logits = jnp.dot(last, w2_ref[...], preferred_element_type=f32) + bfc2_ref[...]
    logits_ref[...] = logits

    cls_iota = lax.broadcasted_iota(jnp.int32, (bsz, ncls), 1)
    mx = jnp.max(logits, axis=-1, keepdims=True)
    pred_f = jnp.min(
        jnp.where(logits >= mx, cls_iota.astype(f32), f32(ncls)),
        axis=-1, keepdims=True,
    )
    pred_ref[...] = pred_f.astype(jnp.int32)

    onehot = (act_ref[...] == cls_iota).astype(f32)           # (Bp, C)
    lse = jnp.log(jnp.sum(jnp.exp(logits - mx), axis=-1, keepdims=True)) + mx
    picked = jnp.sum(onehot * logits, axis=-1, keepdims=True)
    valid = (lax.broadcasted_iota(jnp.int32, (bsz, 1), 0) < b_real).astype(f32)
    per_ex = (lse - picked) * valid                           # zero padded-batch rows
    loss_ref[...] = jnp.sum(per_ex, axis=0, keepdims=True) * (1.0 / b_real)


def lstm_head(gx1, lengths_col, act_col, params, *, t_len, bsz, hdim, ncls, b_real):
    n = t_len * bsz
    kernel = functools.partial(
        _lstm_head_kernel, t_len=t_len, bsz=bsz, hdim=hdim, ncls=ncls, b_real=b_real
    )
    return pl.pallas_call(
        kernel,
        out_shape=(
            jax.ShapeDtypeStruct((bsz, ncls), jnp.float32),
            jax.ShapeDtypeStruct((bsz, 1), jnp.int32),
            jax.ShapeDtypeStruct((1, 1), jnp.float32),
        ),
        grid=(1,),
        in_specs=[
            pl.BlockSpec((n, 4 * hdim), lambda i: (0, 0)),
            pl.BlockSpec((bsz, 1), lambda i: (0, 0)),
            pl.BlockSpec((bsz, 1), lambda i: (0, 0)),
            pl.BlockSpec((hdim, 4 * hdim), lambda i: (0, 0)),
            pl.BlockSpec((hdim, 4 * hdim), lambda i: (0, 0)),
            pl.BlockSpec((hdim, 4 * hdim), lambda i: (0, 0)),
            pl.BlockSpec((1, 4 * hdim), lambda i: (0, 0)),
            pl.BlockSpec((hdim, ncls), lambda i: (0, 0)),
            pl.BlockSpec((1, ncls), lambda i: (0, 0)),
        ],
        out_specs=[
            pl.BlockSpec((bsz, ncls), lambda i: (0, 0)),
            pl.BlockSpec((bsz, 1), lambda i: (0, 0)),
            pl.BlockSpec((1, 1), lambda i: (0, 0)),
        ],
        scratch_shapes=[
            pltpu.VMEM((n, hdim), jnp.float32),       # masked layer-1 outputs
            pltpu.VMEM((n, 4 * hdim), jnp.float32),   # batched layer-2 input gates
        ],
        compiler_params=pltpu.CompilerParams(dimension_semantics=("arbitrary",)),
    )(
        gx1, lengths_col, act_col,
        params["whh1"], params["wih2"], params["whh2"], params["b2"],
        params["fc2_w"], params["fc2_b"],
    )


# ----------------------------------------------------------------------------
# Parameter init (deterministic, PyTorch-default-like uniform bounds)
# ----------------------------------------------------------------------------
def init_params(key, hdim, ncls):
    ks = jax.random.split(key, 16)

    def u(k, shape, bound):
        return jax.random.uniform(k, shape, jnp.float32, -bound, bound)

    p = {}
    b_fc1 = 1.0 / np.sqrt(2048.0)
    p["fc1_w"] = u(ks[0], (2048, hdim), b_fc1)   # (in, out)
    p["fc1_b"] = u(ks[1], (1, hdim), b_fc1)
    b_fch = 1.0 / np.sqrt(126.0)
    p["fch_w"] = u(ks[2], (126, hdim), b_fch)
    p["fch_b"] = u(ks[3], (1, hdim), b_fch)
    b_fc2 = 1.0 / np.sqrt(float(hdim))
    p["fc2_w"] = u(ks[4], (hdim, ncls), b_fc2)
    p["fc2_b"] = u(ks[5], (1, ncls), b_fc2)
    b_l = 1.0 / np.sqrt(float(hdim))
    p["wih1"] = u(ks[6], (2 * hdim, 4 * hdim), b_l)   # transposed W_ih
    p["whh1"] = u(ks[7], (hdim, 4 * hdim), b_l)       # transposed W_hh
    p["b1"] = u(ks[8], (1, 4 * hdim), b_l) + u(ks[9], (1, 4 * hdim), b_l)  # b_ih+b_hh
    p["wih2"] = u(ks[10], (hdim, 4 * hdim), b_l)
    p["whh2"] = u(ks[11], (hdim, 4 * hdim), b_l)
    p["b2"] = u(ks[12], (1, 4 * hdim), b_l) + u(ks[13], (1, 4 * hdim), b_l)
    return p


# ----------------------------------------------------------------------------
# Full forward pass (two pallas_calls total).
# ----------------------------------------------------------------------------
def temporal_forward(params, feats, lh, rh, lengths, act, hdim, ncls):
    t_len, bsz, feat_dim = feats.shape
    hands = jnp.concatenate([lh, rh], axis=-1).astype(jnp.float32)      # (T,B,126)
    feats = feats.astype(jnp.float32)
    hand_dim = hands.shape[-1]

    # Sublane-align the batch (TPU tile is 8 rows); padded rows have length 0
    # and are masked out of state updates and the loss.
    bpad = _round_up(bsz, 8)
    pad_b = bpad - bsz
    if pad_b:
        feats = jnp.pad(feats, ((0, 0), (0, pad_b), (0, 0)))
        hands = jnp.pad(hands, ((0, 0), (0, pad_b), (0, 0)))
    lengths_arr = jnp.asarray(lengths, dtype=jnp.int32)
    act_arr = jnp.asarray(act, dtype=jnp.int32)
    if pad_b:
        lengths_arr = jnp.pad(lengths_arr, (0, pad_b))
        act_arr = jnp.pad(act_arr, (0, pad_b))

    # One-time parameter prep: fold Wih1 into fc1 / fc_h so the big matmul
    # directly produces layer-1 input gates (exact algebraic rewrite).
    wf = params["fc1_w"] @ params["wih1"][:hdim]                        # (2048, 4H)
    wh = params["fch_w"] @ params["wih1"][hdim:]                        # (126, 4H)
    b_in = (params["fc1_b"] @ params["wih1"][:hdim]
            + params["fch_b"] @ params["wih1"][hdim:]
            + params["b1"])                                             # (1, 4H)

    n = t_len * bpad
    gx1 = input_proj(
        feats.reshape(n, feat_dim), hands.reshape(n, hand_dim), wf, wh, b_in
    )                                                                   # (N, 4H)

    logits_p, pred_p, loss = lstm_head(
        gx1, lengths_arr.reshape(bpad, 1), act_arr.reshape(bpad, 1), params,
        t_len=t_len, bsz=bpad, hdim=hdim, ncls=ncls, b_real=bsz,
    )
    return logits_p[:bsz], pred_p[:bsz, 0], loss[0, 0]


# ----------------------------------------------------------------------------
# Pure-JAX reference for a sanity check (uses the unfolded weights).
# ----------------------------------------------------------------------------
def reference_forward(params, feats, lh, rh, lengths, act, hdim, ncls):
    t_len, bsz, _ = feats.shape
    lengths_arr = jnp.asarray(lengths, dtype=jnp.int32)
    hands = jnp.concatenate([lh, rh], axis=-1).astype(jnp.float32)
    h = hands.reshape(t_len * bsz, 126) @ params["fch_w"] + params["fch_b"]
    x = feats.reshape(t_len * bsz, 2048) @ params["fc1_w"] + params["fc1_b"]
    xh = jnp.concatenate([x, h], axis=-1).reshape(t_len, bsz, 2 * hdim)

    def lstm_layer(seq, wih, whh, b):
        hs, cs = jnp.zeros((bsz, hdim)), jnp.zeros((bsz, hdim))
        outs = []
        for t in range(t_len):
            g = seq[t] @ wih + hs @ whh + b
            i = jax.nn.sigmoid(g[:, :hdim])
            f = jax.nn.sigmoid(g[:, hdim: 2 * hdim])
            gg = jnp.tanh(g[:, 2 * hdim: 3 * hdim])
            o = jax.nn.sigmoid(g[:, 3 * hdim:])
            c_new = f * cs + i * gg
            h_new = o * jnp.tanh(c_new)
            m = (t < lengths_arr).astype(jnp.float32)[:, None]
            hs = m * h_new + (1 - m) * hs
            cs = m * c_new + (1 - m) * cs
            outs.append(m * h_new)
        return jnp.stack(outs)

    o1 = lstm_layer(xh, params["wih1"], params["whh1"], params["b1"])
    o2 = lstm_layer(o1, params["wih2"], params["whh2"], params["b2"])
    t_max = int(max(lengths))
    logits = o2[t_max - 1] @ params["fc2_w"] + params["fc2_b"]
    pred = jnp.argmax(logits, axis=1)
    logp = jax.nn.log_softmax(logits, axis=-1)
    loss = -jnp.mean(jnp.take_along_axis(logp, act[:, None], axis=1))
    return logits, pred, loss


if __name__ == "__main__":
    T, B = 8, 4              # seq_len, batch
    HID, NCLS = 32, 8        # n_hidden, act_classes
    lengths = [8, 6, 7, 5]   # data[1]

    key = jax.random.PRNGKey(0)
    kp, kf, kl, kr, ka = jax.random.split(key, 5)
    params = init_params(kp, HID, NCLS)

    feats = jax.random.normal(kf, (T, B, 2048), jnp.float32)
    l_hand = jax.random.normal(kl, (T, B, 63), jnp.float32)
    r_hand = jax.random.normal(kr, (T, B, 63), jnp.float32)
    act = jax.random.randint(ka, (B,), 0, NCLS, jnp.int32)

    out, pred, loss = temporal_forward(
        params, feats, l_hand, r_hand, lengths, act, HID, NCLS
    )
    jax.block_until_ready((out, pred, loss))

    ref_out, ref_pred, ref_loss = reference_forward(
        params, feats, l_hand, r_hand, lengths, act, HID, NCLS
    )
    np.testing.assert_allclose(np.asarray(out), np.asarray(ref_out), rtol=1e-2, atol=1e-2)
    np.testing.assert_allclose(np.asarray(loss), np.asarray(ref_loss), rtol=1e-2, atol=1e-2)

    # TODO(synk): optional bf16 weight/activation cast for v6e/v7x (f32 accumulate)
    # left out to keep the f32 correctness check strict.
    print("KERNEL_OK")
</pallas_src>

<mosaic_0001>
module attributes {stable_mosaic.version = 11 : i64} {
  func.func @_input_proj_kernel(%arg0: i32, %arg1: memref<64x2048xf32, #tpu.memory_space<vmem>>, %arg2: memref<64x126xf32, #tpu.memory_space<vmem>>, %arg3: memref<2048x128xf32, #tpu.memory_space<vmem>>, %arg4: memref<126x128xf32, #tpu.memory_space<vmem>>, %arg5: memref<1x128xf32, #tpu.memory_space<vmem>>, %arg6: memref<64x128xf32, #tpu.memory_space<vmem>>) attributes {dimension_semantics = [#tpu.dimension_semantics<parallel>], iteration_bounds = array<i64: 1>, scalar_prefetch = 0 : i64, scratch_operands = 0 : i64, tpu.core_type = #tpu.core_type<tc>, window_params = [{transform_indices = @transform_0, window_bounds = array<i64: 64, 2048>}, {transform_indices = @transform_1, window_bounds = array<i64: 64, 126>}, {pipeline_mode = #tpu.pipeline_mode<synchronous>, transform_indices = @transform_2, window_bounds = array<i64: 2048, 128>}, {pipeline_mode = #tpu.pipeline_mode<synchronous>, transform_indices = @transform_3, window_bounds = array<i64: 126, 128>}, {pipeline_mode = #tpu.pipeline_mode<synchronous>, transform_indices = @transform_4, window_bounds = array<i64: 1, 128>}, {transform_indices = @transform_5, window_bounds = array<i64: 64, 128>}]} {
    %c0 = arith.constant 0 : index
    %c0_0 = arith.constant 0 : index
    %0 = vector.load %arg1[%c0, %c0_0] : memref<64x2048xf32, #tpu.memory_space<vmem>>, vector<64x2048xf32>
    %c0_1 = arith.constant 0 : index
    %c0_2 = arith.constant 0 : index
    %1 = vector.load %arg3[%c0_1, %c0_2] : memref<2048x128xf32, #tpu.memory_space<vmem>>, vector<2048x128xf32>
    %cst = arith.constant dense<0.000000e+00> : vector<64x128xf32>
    %2 = tpu.matmul %0, %1, %cst {dimension_numbers = #tpu.dot_dimension_numbers<[1], [0], [0], [1], [0, 0, 1, 1], [], []>} : vector<64x2048xf32>, vector<2048x128xf32>, vector<64x128xf32> -> vector<64x128xf32>
    %c0_3 = arith.constant 0 : index
    %c0_4 = arith.constant 0 : index
    %3 = vector.load %arg2[%c0_3, %c0_4] : memref<64x126xf32, #tpu.memory_space<vmem>>, vector<64x126xf32>
    %c0_5 = arith.constant 0 : index
    %c0_6 = arith.constant 0 : index
    %4 = vector.load %arg4[%c0_5, %c0_6] : memref<126x128xf32, #tpu.memory_space<vmem>>, vector<126x128xf32>
    %cst_7 = arith.constant dense<0.000000e+00> : vector<64x128xf32>
    %5 = tpu.matmul %3, %4, %cst_7 {dimension_numbers = #tpu.dot_dimension_numbers<[1], [0], [0], [1], [0, 0, 1, 1], [], []>} : vector<64x126xf32>, vector<126x128xf32>, vector<64x128xf32> -> vector<64x128xf32>
    %6 = arith.addf %2, %5 : vector<64x128xf32>
    %c0_8 = arith.constant 0 : index
    %c0_9 = arith.constant 0 : index
    %7 = vector.load %arg5[%c0_8, %c0_9] : memref<1x128xf32, #tpu.memory_space<vmem>>, vector<1x128xf32>
    %8 = vector.broadcast %7 : vector<1x128xf32> to vector<64x128xf32>
    %9 = arith.addf %6, %8 : vector<64x128xf32>
    %c0_10 = arith.constant 0 : index
    %c0_11 = arith.constant 0 : index
    %10 = vector.load %arg6[%c0_10, %c0_11] : memref<64x128xf32, #tpu.memory_space<vmem>>, vector<64x128xf32>
    tpu.vector_store %arg6[%c0_10, %c0_11], %9 {strides = array<i32>} : memref<64x128xf32, #tpu.memory_space<vmem>>, vector<64x128xf32>,
    return
  }
  func.func @transform_0(%arg0: i32) -> (i32, i32) {
    %c0_i32 = arith.constant 0 : i32
    %c0_i32_0 = arith.constant 0 : i32
    return %arg0, %c0_i32 : i32, i32
  }
  func.func @transform_1(%arg0: i32) -> (i32, i32) {
    %c0_i32 = arith.constant 0 : i32
    %c0_i32_0 = arith.constant 0 : i32
    return %arg0, %c0_i32 : i32, i32
  }
  func.func @transform_2(%arg0: i32) -> (i32, i32) {
    %c0_i32 = arith.constant 0 : i32
    %c0_i32_0 = arith.constant 0 : i32
    %c0_i32_1 = arith.constant 0 : i32
    return %c0_i32, %c0_i32_0 : i32, i32
  }
  func.func @transform_3(%arg0: i32) -> (i32, i32) {
    %c0_i32 = arith.constant 0 : i32
    %c0_i32_0 = arith.constant 0 : i32
    %c0_i32_1 = arith.constant 0 : i32
    return %c0_i32, %c0_i32_0 : i32, i32
  }
  func.func @transform_4(%arg0: i32) -> (i32, i32) {
    %c0_i32 = arith.constant 0 : i32
    %c0_i32_0 = arith.constant 0 : i32
    %c0_i32_1 = arith.constant 0 : i32
    return %c0_i32, %c0_i32_0 : i32, i32
  }
  func.func @transform_5(%arg0: i32) -> (i32, i32) {
    %c0_i32 = arith.constant 0 : i32
    %c0_i32_0 = arith.constant 0 : i32
    return %arg0, %c0_i32 : i32, i32
  }
}

</mosaic_0001>

<bundles_post_ra>
// kernel: tpu_custom_call.1
= control target key start
LH: loop header
LB: loop body
LE: loop exit
PB: predicated region body
PF: predicated region fallthrough
CT: control target
= control target key end

     0   :  { %10 = vsyncpa [#allocation3], 0  ;;  %s2599_s0 = inlined_call_operand.hbm [shape: f32[64,2048], index: 0, kind: input, shape index: {}]   ;;  %s2600_s1 = inlined_call_operand.hbm [shape: f32[64,126], index: 1, kind: input, shape index: {}]   ;;  %s2601_s2 = inlined_call_operand.hbm [shape: f32[2048,128], index: 2, kind: input, shape index: {}]   ;;  %s2602_s3 = inlined_call_operand.hbm [shape: f32[126,128], index: 3, kind: input, shape index: {}]   ;;  %s2603_s4 = inlined_call_operand.vmem [shape: f32[1,128], index: 4, kind: input, shape index: {}]   ;;  %s2604_s5 = inlined_call_operand.hbm [shape: f32[64,128], index: 5, kind: output, shape index: {}]  }
   0x1   :  { %11 = vsyncpa [#allocation6], 0 }
   0x2   :  { %12 = vsyncpa [#allocation9], 0 }
   0x3   :  { %13 = vsyncpa [#allocation4], 0  ;;  %s2459_s18 = smov [#allocation5]   ;;  %s2341_s22 = scalar_lea.hbm %s2600_s1, 1024 }
   0x4   :  { %s31_s19 = sshll.u32 %s2459_s18, 4  ;;  %p2342_p0 = scmp.ne.s32.totalorder %s2600_s1, %s2341_s22  ;;  %s32_s19 = int_to_ptr.vmem [resolvable:$true] %s31_s19 }
   0x5   :  { %p2345_p1 = scmp.lt.u32.totalorder %s2341_s22, %s2600_s1 }
   0x7   :  { %p2347_p2 = pnand %p2345_p1, %p2342_p0 }
   0x9   :  { %2350 = shalt.err (!%p2347_p2)
}
   0xa   :  { %s2351_s27 = scalar_lea.vmem %s32_s19, 1024  ;;  %p2356_p4 = scmp.lt.s32.totalorder %s32_s19, %s32_s19 }
   0xb   :  { %p2352_p3 = scmp.ne.s32.totalorder %s32_s19, %s2351_s27  ;;  %p2357_p5 = scmp.lt.s32.totalorder %s2351_s27, %s2351_s27 }
   0xd   :  { %p2358_p6 = por %p2357_p5, %p2356_p4 }
   0xf   :  { %p2359_p7 = pnand %p2358_p6, %p2352_p3 }
  0x11   :  { %2362 = shalt.err (!%p2359_p7)
}
  0x12   :  { %s2460_s28 = smov 128   ;;  %s2461_s29 = smov 8  }
  0x13   :  { %37 = dma.hbm_to_vmem [thread:$0]  %s2600_s1, 1024, %s32_s19, [#allocation6], %s2460_s28, %s2460_s28, %s2461_s29  }
  0x14   :  { %s2462_s7 = smov [#allocation2]   ;;  %s2363_s11 = scalar_lea.hbm %s2599_s0, 16384 }
  0x15   :  { %s19_s8 = sshll.u32 %s2462_s7, 4  ;;  %p2364_p8 = scmp.ne.s32.totalorder %s2599_s0, %s2363_s11  ;;  %s20_s8 = int_to_ptr.vmem [resolvable:$true] %s19_s8 }
  0x16   :  { %p2367_p9 = scmp.lt.u32.totalorder %s2363_s11, %s2599_s0 }
  0x18   :  { %p2369_p10 = pnand %p2367_p9, %p2364_p8 }
  0x1a   :  { %2372 = shalt.err (!%p2369_p10)
}
  0x1b   :  { %s2373_s16 = scalar_lea.vmem %s20_s8, 16384  ;;  %p2378_p12 = scmp.lt.s32.totalorder %s20_s8, %s20_s8 }
  0x1c   :  { %p2374_p11 = scmp.ne.s32.totalorder %s20_s8, %s2373_s16  ;;  %p2379_p13 = scmp.lt.s32.totalorder %s2373_s16, %s2373_s16 }
  0x1e   :  { %p2380_p0 = por %p2379_p13, %p2378_p12 }
  0x20   :  { %p2381_p1 = pnand %p2380_p0, %p2374_p11 }
  0x22   :  { %2384 = shalt.err (!%p2381_p1)
}
  0x23   :  { %s2463_s1 = smov 2048   ;;  %s2464_s19 = smov [#allocation7]  }
  0x24   :  { %25 = dma.hbm_to_vmem [thread:$0]  %s2599_s0, 16384, %s20_s8, [#allocation3], %s2463_s1, %s2463_s1, %s2460_s28  }
  0x25   :  { %s43_s20 = sshll.u32 %s2464_s19, 4  ;;  %s2465_s21 = smov [#allocation8]   ;;  %s44_s20 = int_to_ptr.vmem [resolvable:$true] %s43_s20 }
  0x26   :  { %s55_s22 = sshll.u32 %s2465_s21, 4  ;;  %s2385_s25 = scalar_lea.hbm %s2601_s2, 32768  ;;  %s56_s22 = int_to_ptr.vmem [resolvable:$true] %s55_s22 }
  0x27   :  { %p2386_p2 = scmp.ne.s32.totalorder %s2601_s2, %s2385_s25  ;;  %p2389_p3 = scmp.lt.u32.totalorder %s2385_s25, %s2601_s2 }
  0x29   :  { %p2391_p4 = pnand %p2389_p3, %p2386_p2 }
  0x2b   :  { %2394 = shalt.err (!%p2391_p4)
}
  0x2c   :  { %s2395_s0 = scalar_lea.vmem %s44_s20, 32768  ;;  %p2400_p6 = scmp.lt.s32.totalorder %s44_s20, %s44_s20 }
  0x2d   :  { %p2396_p5 = scmp.ne.s32.totalorder %s44_s20, %s2395_s0  ;;  %p2401_p7 = scmp.lt.s32.totalorder %s2395_s0, %s2395_s0 }
  0x2f   :  { %p2402_p8 = por %p2401_p7, %p2400_p6 }
  0x31   :  { %p2403_p9 = pnand %p2402_p8, %p2396_p5 }
  0x33   :  { %2406 = shalt.err (!%p2403_p9)
}
  0x34   :  { %49 = dma.hbm_to_vmem [thread:$0]  %s2601_s2, 32768, %s44_s20, [#allocation6], %s2460_s28, %s2460_s28, %s2461_s29  }
  0x35   :  { %s2407_s11 = scalar_lea.hbm %s2602_s3, 2048 }
  0x36   :  { %p2408_p10 = scmp.ne.s32.totalorder %s2602_s3, %s2407_s11  ;;  %p2411_p11 = scmp.lt.u32.totalorder %s2407_s11, %s2602_s3 }
  0x38   :  { %p2413_p12 = pnand %p2411_p11, %p2408_p10 }
  0x3a   :  { %2416 = shalt.err (!%p2413_p12)
}
  0x3b   :  { %s2417_s16 = scalar_lea.vmem %s56_s22, 2048  ;;  %p2422_p0 = scmp.lt.s32.totalorder %s56_s22, %s56_s22 }
  0x3c   :  { %p2418_p13 = scmp.ne.s32.totalorder %s56_s22, %s2417_s16  ;;  %p2423_p1 = scmp.lt.s32.totalorder %s2417_s16, %s2417_s16 }
  0x3e   :  { %p2424_p2 = por %p2423_p1, %p2422_p0 }
  0x40   :  { %p2425_p3 = pnand %p2424_p2, %p2418_p13 }
  0x42   :  { %2428 = shalt.err (!%p2425_p3)
}
  0x43   :  { %61 = dma.hbm_to_vmem [thread:$0]  %s2602_s3, 2048, %s56_s22, [#allocation9], %s2460_s28, %s2460_s28, %s2461_s29  }
  0x44   :  { %2451 = dma.done.wait [#allocation3], 16384  }
  0x45   :  { %2452 = vsyncadd [#allocation3], 4294950912 }
  0x46   :  { %2453 = dma.done.wait [#allocation6], 33792  }
  0x47   :  { %2454 = vsyncadd [#allocation6], 4294933504 }
  0x48   :  { %2455 = dma.done.wait [#allocation9], 2048  }
  0x49   :  { %2456 = vsyncadd [#allocation9], 4294965248  ;;  %v468_v0 = vld [vmem:[#allocation8] sm:$0xff]  ;;  %v469_v1 = vld [vmem:[#allocation8 + $0x8] sm:$0xff]  ;;  %vm484_vm0 = vcmask 1031168   ;;  %vm509_vm1 = vcmask 1045504  }
  0x4a   :  { %v220_v2 = vld [vmem:[#allocation7 + $0x80] sm:$0xff]  ;;  %v2026_v3 = vpack.c.bf16 %v469_v1, %v468_v0  ;;  %v221_v4 = vld [vmem:[#allocation7 + $0x88] sm:$0xff]  ;;  %v470_v9 = vld [vmem:[#allocation8 + $0x10] sm:$0xff]  ;;  %vm2466_vm2 = vmmov 1  }
  0x4b   :  { %v204_v5 = vld [vmem:[#allocation7] sm:$0xff]  ;;  %v205_v6 = vld [vmem:[#allocation7 + $0x8] sm:$0xff]  ;;  %v2060_v7 = vpack.c.bf16 %v221_v4, %v220_v2  ;;  %v471_v10 = vld [vmem:[#allocation8 + $0x18] sm:$0xff] }
  0x4c   :  { %v2062_v8 = vpack.c.bf16 %v205_v6, %v204_v5  ;;  %v222_v11 = vld [vmem:[#allocation7 + $0x90] sm:$0xff]  ;;  %2027 = vmatprep.subr.bf16.mxu0 %v2026_v3  ;;  %v2030_v12 = vpack.c.bf16 %v471_v10, %v470_v9  ;;  %v223_v13 = vld [vmem:[#allocation7 + $0x98] sm:$0xff]  ;;  %v472_v17 = vld [vmem:[#allocation8 + $0x20] sm:$0xff] }
  0x4d   :  { %v206_v14 = vld [vmem:[#allocation7 + $0x10] sm:$0xff]  ;;  %v207_v15 = vld [vmem:[#allocation7 + $0x18] sm:$0xff]  ;;  %2061 = vmatprep.subr.bf16.mxu1 %v2060_v7  ;;  %2029 = vmatpush3.bf16.msra.mxu0 %v2026_v3  ;;  %v2064_v16 = vpack.c.bf16 %v223_v13, %v222_v11  ;;  %v473_v18 = vld [vmem:[#allocation8 + $0x28] sm:$0xff] }
  0x4e   :  { %v224_v19 = vld [vmem:[#allocation7 + $0xa0] sm:$0xff]  ;;  %2063 = vmatpush3.bf16.msra.mxu1 %v2062_v8  ;;  %2031 = vmatprep.subr.bf16.mxu0 %v2030_v12  ;;  %v2066_v20 = vpack.c.bf16 %v207_v15, %v206_v14  ;;  %v2034_v21 = vpack.c.bf16 %v473_v18, %v472_v17  ;;  %v225_v22 = vld [vmem:[#allocation7 + $0xa8] sm:$0xff]  ;;  %v474_v26 = vld [vmem:[#allocation8 + $0x30] sm:$0xff] }
  0x4f   :  { %v208_v23 = vld [vmem:[#allocation7 + $0x20] sm:$0xff]  ;;  %2065 = vmatprep.subr.bf16.mxu1 %v2064_v16  ;;  %v2068_v24 = vpack.c.bf16 %v225_v22, %v224_v19  ;;  %v209_v25 = vld [vmem:[#allocation7 + $0x28] sm:$0xff]  ;;  %v475_v27 = vld [vmem:[#allocation8 + $0x38] sm:$0xff] }
  0x50   :  { %v226_v28 = vld [vmem:[#allocation7 + $0xb0] sm:$0xff]  ;;  %v227_v29 = vld [vmem:[#allocation7 + $0xb8] sm:$0xff]  ;;  %v2070_v30 = vpack.c.bf16 %v209_v25, %v208_v23  ;;  %v2038_v31 = vpack.c.bf16 %v475_v27, %v474_v26  ;;  %v476_v35 = vld [vmem:[#allocation8 + $0x40] sm:$0xff] }
  0x51   :  { %2033 = vmatpush3.bf16.msra.mxu0 %v2030_v12  ;;  %v210_v32 = vld [vmem:[#allocation7 + $0x30] sm:$0xff]  ;;  %v2072_v33 = vpack.c.bf16 %v227_v29, %v226_v28  ;;  %v211_v34 = vld [vmem:[#allocation7 + $0x38] sm:$0xff]  ;;  %v477_v36 = vld [vmem:[#allocation8 + $0x48] sm:$0xff] }
  0x52   :  { %2067 = vmatpush3.bf16.msra.mxu1 %v2066_v20  ;;  %2035 = vmatprep.subr.bf16.mxu0 %v2034_v21  ;;  %v228_v37 = vld [vmem:[#allocation7 + $0xc0] sm:$0xff]  ;;  %v229_v38 = vld [vmem:[#allocation7 + $0xc8] sm:$0xff]  ;;  %v2074_v39 = vpack.c.bf16 %v211_v34, %v210_v32  ;;  %v2042_v40 = vpack.c.bf16 %v477_v36, %v476_v35  ;;  %v478_v44 = vld [vmem:[#allocation8 + $0x50] sm:$0xff] }
  0x53   :  { %2069 = vmatprep.subr.bf16.mxu1 %v2068_v24  ;;  %v212_v41 = vld [vmem:[#allocation7 + $0x40] sm:$0xff]  ;;  %v2076_v42 = vpack.c.bf16 %v229_v38, %v228_v37  ;;  %v213_v43 = vld [vmem:[#allocation7 + $0x48] sm:$0xff]  ;;  %v479_v45 = vld [vmem:[#allocation8 + $0x58] sm:$0xff] }
  0x54   :  { %v230_v46 = vld [vmem:[#allocation7 + $0xd0] sm:$0xff]  ;;  %v231_v47 = vld [vmem:[#allocation7 + $0xd8] sm:$0xff]  ;;  %v460_v48 = vld [vmem:[#allocation5] sm:$0xff]  ;;  %v2078_v50 = vpack.c.bf16 %v213_v43, %v212_v41  ;;  %v2046_v51 = vpack.c.bf16 %v479_v45, %v478_v44 }
  0x55   :  { %2037 = vmatpush3.bf16.msra.mxu0 %v2034_v21  ;;  %v77_v49 = vld [vmem:[#allocation2 + $0x8] sm:$0xff]  ;;  %v214_v52 = vld [vmem:[#allocation7 + $0x50] sm:$0xff]  ;;  %v2080_v53 = vpack.c.bf16 %v231_v47, %v230_v46  ;;  %v215_v54 = vld [vmem:[#allocation7 + $0x58] sm:$0xff]  ;;  %2014 = vmatprep.mubr.msk.f32.mxu0 %vm484_vm0, %v460_v48 }
  0x56   :  { %2071 = vmatpush3.bf16.msra.mxu1 %v2070_v30  ;;  %2039 = vmatprep.subr.bf16.mxu0 %v2038_v31  ;;  %v480_v55 = vld [vmem:[#allocation8 + $0x60] sm:$0xff]  ;;  %v481_v56 = vld [vmem:[#allocation8 + $0x68] sm:$0xff]  ;;  %v2082_v59 = vpack.c.bf16 %v215_v54, %v214_v52  ;;  %v482_v0 = vld [vmem:[#allocation8 + $0x70] sm:$0xff] }
  0x57   :  { %2073 = vmatprep.subr.bf16.mxu1 %v2072_v33  ;;  %v232_v57 = vld [vmem:[#allocation7 + $0xe0] sm:$0xff]  ;;  %v233_v58 = vld [vmem:[#allocation7 + $0xe8] sm:$0xff]  ;;  %682 = vmatprep.mubr.f32.mxu1 %v77_v49  ;;  %v2050_v60 = vpack.c.bf16 %v481_v56, %v480_v55  ;;  %v483_v1 = vld [vmem:[#allocation8 + $0x78] sm:$0x3f] }
  0x58   :  { %v216_v61 = vld [vmem:[#allocation7 + $0x60] sm:$0xff]  ;;  %v2084_v62 = vpack.c.bf16 %v233_v58, %v232_v57  ;;  %v217_v63 = vld [vmem:[#allocation7 + $0x68] sm:$0xff]  ;;  %v234_v2 = vld [vmem:[#allocation7 + $0xf0] sm:$0xff]  ;;  %v2054_v5 = vpack.c.bf16 %v483_v1, %v482_v0 }
  0x59   :  { %2041 = vmatpush3.bf16.msra.mxu0 %v2038_v31  ;;  %v235_v3 = vld [vmem:[#allocation7 + $0xf8] sm:$0xff]  ;;  %v2086_v4 = vpack.c.bf16 %v217_v63, %v216_v61  ;;  %vm2557_vm3 = vmpackc.low %vm509_vm1, %vm2466_vm2  ;;  %v218_v7 = vld [vmem:[#allocation7 + $0x70] sm:$0xff] }
  0x5a   :  { %2075 = vmatpush3.bf16.msra.mxu1 %v2074_v39  ;;  %2043 = vmatprep.subr.bf16.mxu0 %v2042_v40  ;;  %v2088_v8 = vpack.c.bf16 %v235_v3, %v234_v2  ;;  %v219_v9 = vld [vmem:[#allocation7 + $0x78] sm:$0xff]  ;;  %v252_v10 = vld [vmem:[#allocation7 + $0x180] sm:$0xff]  ;;  %v253_v11 = vld [vmem:[#allocation7 + $0x188] sm:$0xff] }
  0x5b   :  { %2077 = vmatprep.subr.bf16.mxu1 %v2076_v42  ;;  %v284_v12 = vld [vmem:[#allocation7 + $0x280] sm:$0xff]  ;;  %v285_v13 = vld [vmem:[#allocation7 + $0x288] sm:$0xff]  ;;  %v2090_v14 = vpack.c.bf16 %v219_v9, %v218_v7  ;;  %v2092_v15 = vpack.c.bf16 %v253_v11, %v252_v10  ;;  %v254_v21 = vld [vmem:[#allocation7 + $0x190] sm:$0xff] }
  0x5c   :  { %v236_v16 = vld [vmem:[#allocation7 + $0x100] sm:$0xff]  ;;  %v237_v17 = vld [vmem:[#allocation7 + $0x108] sm:$0xff]  ;;  %v2124_v18 = vpack.c.bf16 %v285_v13, %v284_v12  ;;  %v255_v22 = vld [vmem:[#allocation7 + $0x198] sm:$0xff] }
  0x5d   :  { %2045 = vmatpush3.bf16.msra.mxu0 %v2042_v40  ;;  %v268_v19 = vld [vmem:[#allocation7 + $0x200] sm:$0xff]  ;;  %v269_v20 = vld [vmem:[#allocation7 + $0x208] sm:$0xff]  ;;  %v286_v23 = vld [vmem:[#allocation7 + $0x290] sm:$0xff]  ;;  %v2094_v27 = vpack.c.bf16 %v237_v17, %v236_v16  ;;  %v2096_v32 = vpack.c.bf16 %v255_v22, %v254_v21 }
  0x5e   :  { %2079 = vmatpush3.bf16.msra.mxu1 %v2078_v50  ;;  %2047 = vmatprep.subr.bf16.mxu0 %v2046_v51  ;;  %v287_v24 = vld [vmem:[#allocation7 + $0x298] sm:$0xff]  ;;  %v461_v25 = vld [vmem:[#allocation5 + $0x8] sm:$0xff]  ;;  %v76_v26 = vld [vmem:[#allocation2] sm:$0xff]  ;;  %v2126_v28 = vpack.c.bf16 %v269_v20, %v268_v19 }
  0x5f   :  { %2081 = vmatprep.subr.bf16.mxu1 %v2080_v53  ;;  %v93_v29 = vld [vmem:[#allocation2 + $0x88] sm:$0xff]  ;;  %v238_v30 = vld [vmem:[#allocation7 + $0x110] sm:$0xff]  ;;  %v239_v31 = vld [vmem:[#allocation7 + $0x118] sm:$0xff]  ;;  %v2128_v33 = vpack.c.bf16 %v287_v24, %v286_v23 }
  0x60   :  { %v270_v34 = vld [vmem:[#allocation7 + $0x210] sm:$0xff]  ;;  %v271_v35 = vld [vmem:[#allocation7 + $0x218] sm:$0xff]  ;;  %v256_v36 = vld [vmem:[#allocation7 + $0x1a0] sm:$0xff]  ;;  %v2098_v41 = vpack.c.bf16 %v239_v31, %v238_v30 }
  0x61   :  { %2049 = vmatpush3.bf16.msra.mxu0 %v2046_v51  ;;  %v257_v37 = vld [vmem:[#allocation7 + $0x1a8] sm:$0xff]  ;;  %v288_v38 = vld [vmem:[#allocation7 + $0x2a0] sm:$0xff]  ;;  %v462_v42 = vld [vmem:[#allocation5 + $0x10] sm:$0xff]  ;;  %v2130_v43 = vpack.c.bf16 %v271_v35, %v270_v34 }
  0x62   :  { %2083 = vmatpush3.bf16.msra.mxu1 %v2082_v59  ;;  %2051 = vmatprep.subr.bf16.mxu0 %v2050_v60  ;;  %v289_v39 = vld [vmem:[#allocation7 + $0x2a8] sm:$0xff]  ;;  %v92_v40 = vld [vmem:[#allocation2 + $0x80] sm:$0xff]  ;;  %v2100_v47 = vpack.c.bf16 %v257_v37, %v256_v36  ;;  %v258_v51 = vld [vmem:[#allocation7 + $0x1b0] sm:$0xff] }
  0x63   :  { %2085 = vmatprep.subr.bf16.mxu1 %v2084_v62  ;;  %v109_v44 = vld [vmem:[#allocation2 + $0x108] sm:$0xff]  ;;  %v240_v45 = vld [vmem:[#allocation7 + $0x120] sm:$0xff]  ;;  %v2132_v48 = vpack.c.bf16 %v289_v39, %v288_v38  ;;  %v259_v52 = vld [vmem:[#allocation7 + $0x1b8] sm:$0xff] }
  0x64   :  { %v241_v46 = vld [vmem:[#allocation7 + $0x128] sm:$0xff]  ;;  %v272_v49 = vld [vmem:[#allocation7 + $0x220] sm:$0xff]  ;;  %v290_v53 = vld [vmem:[#allocation7 + $0x2b0] sm:$0xff]  ;;  %v2104_v62 = vpack.c.bf16 %v259_v52, %v258_v51 }
  0x65   :  { %2053 = vmatpush3.bf16.msra.mxu0 %v2050_v60  ;;  %v273_v50 = vld [vmem:[#allocation7 + $0x228] sm:$0xff]  ;;  %v291_v54 = vld [vmem:[#allocation7 + $0x2b8] sm:$0xff]  ;;  %v108_v55 = vld [vmem:[#allocation2 + $0x100] sm:$0xff]  ;;  %v2102_v56 = vpack.c.bf16 %v241_v46, %v240_v45 }
  0x66   :  { %2087 = vmatpush3.bf16.msra.mxu1 %v2086_v4  ;;  %2056 = vmatprep.subr.msk.bf16.mxu0 %vm2557_vm3, %v2054_v5  ;;  %v463_v57 = vld [vmem:[#allocation5 + $0x18] sm:$0xff]  ;;  %v2134_v58 = vpack.c.bf16 %v273_v50, %v272_v49  ;;  %v125_v59 = vld [vmem:[#allocation2 + $0x188] sm:$0xff]  ;;  %v242_v60 = vld [vmem:[#allocation7 + $0x130] sm:$0xff]  ;;  %v2136_v63 = vpack.c.bf16 %v291_v54, %v290_v53 }
  0x67   :  { %2089 = vmatprep.subr.bf16.mxu1 %v2088_v8  ;;  %v243_v61 = vld [vmem:[#allocation7 + $0x138] sm:$0xff]  ;;  %v274_v0 = vld [vmem:[#allocation7 + $0x230] sm:$0xff]  ;;  %v260_v2 = vld [vmem:[#allocation7 + $0x1c0] sm:$0xff] }
  0x68   :  { %v275_v1 = vld [vmem:[#allocation7 + $0x238] sm:$0xff]  ;;  %v261_v3 = vld [vmem:[#allocation7 + $0x1c8] sm:$0xff]  ;;  %v292_v4 = vld [vmem:[#allocation7 + $0x2c0] sm:$0xff]  ;;  %v2106_v7 = vpack.c.bf16 %v243_v61, %v242_v60 }
  0x69   :  { %2059 = vmatpush3.bf16.msk.msra.mxu0 %vm2557_vm3, %v2054_v5  ;;  %v293_v5 = vld [vmem:[#allocation7 + $0x2c8] sm:$0xff]  ;;  %v124_v6 = vld [vmem:[#allocation2 + $0x180] sm:$0xff]  ;;  %v2138_v9 = vpack.c.bf16 %v275_v1, %v274_v0  ;;  %v2108_v13 = vpack.c.bf16 %v261_v3, %v260_v2  ;;  %v262_v17 = vld [vmem:[#allocation7 + $0x1d0] sm:$0xff] }
  0x6a   :  { %2091 = vmatpush3.bf16.msra.mxu1 %v2090_v14  ;;  %2093 = vmatprep.subr.bf16.mxu0 %v2092_v15  ;;  %v464_v8 = vld [vmem:[#allocation5 + $0x20] sm:$0xff]  ;;  %v141_v10 = vld [vmem:[#allocation2 + $0x208] sm:$0xff]  ;;  %v2140_v14 = vpack.c.bf16 %v293_v5, %v292_v4  ;;  %v294_v19 = vld [vmem:[#allocation7 + $0x2d0] sm:$0xff] }
  0x6b   :  { %2125 = vmatprep.subr.bf16.mxu1 %v2124_v18  ;;  %v244_v11 = vld [vmem:[#allocation7 + $0x140] sm:$0xff]  ;;  %v245_v12 = vld [vmem:[#allocation7 + $0x148] sm:$0xff]  ;;  %v263_v18 = vld [vmem:[#allocation7 + $0x1d8] sm:$0xff] }
  0x6c   :  { %2015 = vmatmul.mubr.msk.f32.vlgmr.msra.gmra.mrb[0].mxu0 %vm484_vm0, %v461_v25  ;;  %v276_v15 = vld [vmem:[#allocation7 + $0x240] sm:$0xff]  ;;  %v277_v16 = vld [vmem:[#allocation7 + $0x248] sm:$0xff]  ;;  %v295_v20 = vld [vmem:[#allocation7 + $0x2d8] sm:$0xff]  ;;  %v2110_v22 = vpack.c.bf16 %v245_v12, %v244_v11 }
  0x6d   :  { %683 = vmatmul.mubr.f32.vlgmr.msra.gmra.mrb[0].mxu1 %v76_v26  ;;  %2095 = vmatpush3.bf16.msra.mxu0 %v2094_v27  ;;  %v140_v21 = vld [vmem:[#allocation2 + $0x200] sm:$0xff]  ;;  %v465_v23 = vld [vmem:[#allocation5 + $0x28] sm:$0xff]  ;;  %v2142_v24 = vpack.c.bf16 %v277_v16, %v276_v15  ;;  %v246_v26 = vld [vmem:[#allocation7 + $0x150] sm:$0xff] }
  0x6e   :  { %2127 = vmatpush3.bf16.msra.mxu1 %v2126_v28  ;;  %687 = vmatprep.mubr.f32.mxu1 %v93_v29  ;;  %v157_v25 = vld [vmem:[#allocation2 + $0x288] sm:$0xff]  ;;  %v247_v27 = vld [vmem:[#allocation7 + $0x158] sm:$0xff]  ;;  %v2112_v28 = vpack.c.bf16 %v263_v18, %v262_v17  ;;  %v2144_v29 = vpack.c.bf16 %v295_v20, %v294_v19  ;;  %v278_v30 = vld [vmem:[#allocation7 + $0x250] sm:$0xff] }
  0x6f   :  { %2097 = vmatprep.subr.bf16.mxu0 %v2096_v32  ;;  %2129 = vmatprep.subr.bf16.mxu1 %v2128_v33  ;;  %v279_v31 = vld [vmem:[#allocation7 + $0x258] sm:$0xff]  ;;  %v264_v32 = vld [vmem:[#allocation7 + $0x1e0] sm:$0xff]  ;;  %v265_v33 = vld [vmem:[#allocation7 + $0x1e8] sm:$0xff]  ;;  %v2114_v37 = vpack.c.bf16 %v247_v27, %v246_v26 }
  0x70   :  { %2017 = vmatprep.mubr.msk.f32.mxu0 %vm484_vm0, %v462_v42  ;;  %v296_v34 = vld [vmem:[#allocation7 + $0x2e0] sm:$0xff]  ;;  %v297_v35 = vld [vmem:[#allocation7 + $0x2e8] sm:$0xff]  ;;  %v466_v38 = vld [vmem:[#allocation5 + $0x30] sm:$0xff]  ;;  %v2146_v39 = vpack.c.bf16 %v279_v31, %v278_v30 }
  0x71   :  { %688 = vmatmul.mubr.f32.gmra.mrb[2].mxu1 %v92_v40  ;;  %2099 = vmatpush3.bf16.msra.mxu0 %v2098_v41  ;;  %v156_v36 = vld [vmem:[#allocation2 + $0x280] sm:$0xff]  ;;  %v173_v40 = vld [vmem:[#allocation2 + $0x308] sm:$0xff]  ;;  %v298_v49 = vld [vmem:[#allocation7 + $0x2f0] sm:$0xff] }
  0x72   :  { %2131 = vmatpush3.bf16.msra.mxu1 %v2130_v43  ;;  %692 = vmatprep.mubr.f32.mxu1 %v109_v44  ;;  %v248_v41 = vld [vmem:[#allocation7 + $0x160] sm:$0xff]  ;;  %v249_v42 = vld [vmem:[#allocation7 + $0x168] sm:$0xff]  ;;  %v2116_v43 = vpack.c.bf16 %v265_v33, %v264_v32  ;;  %v2148_v44 = vpack.c.bf16 %v297_v35, %v296_v34  ;;  %v299_v50 = vld [vmem:[#allocation7 + $0x2f8] sm:$0xff] }
  0x73   :  { %2101 = vmatprep.subr.bf16.mxu0 %v2100_v47  ;;  %2133 = vmatprep.subr.bf16.mxu1 %v2132_v48  ;;  %v280_v45 = vld [vmem:[#allocation7 + $0x260] sm:$0xff]  ;;  %v281_v46 = vld [vmem:[#allocation7 + $0x268] sm:$0xff]  ;;  %v266_v47 = vld [vmem:[#allocation7 + $0x1f0] sm:$0xff]  ;;  %v2118_v52 = vpack.c.bf16 %v249_v42, %v248_v41 }
  0x74   :  { %2018 = vmatmul.mubr.msk.f32.gmra.mrb[2].mxu0 %vm484_vm0, %v463_v57  ;;  %v267_v48 = vld [vmem:[#allocation7 + $0x1f8] sm:$0xff]  ;;  %v172_v51 = vld [vmem:[#allocation2 + $0x300] sm:$0xff]  ;;  %v2150_v54 = vpack.c.bf16 %v281_v46, %v280_v45  ;;  %v282_v60 = vld [vmem:[#allocation7 + $0x270] sm:$0xff] }
  0x75   :  { %693 = vmatmul.mubr.f32.gmra.mrb[4].mxu1 %v108_v55  ;;  %2103 = vmatpush3.bf16.msra.mxu0 %v2102_v56  ;;  %v467_v53 = vld [vmem:[#allocation5 + $0x38] sm:$0xff]  ;;  %v189_v55 = vld [vmem:[#allocation2 + $0x388] sm:$0xff]  ;;  %v250_v56 = vld [vmem:[#allocation7 + $0x170] sm:$0xff] }
  0x76   :  { %2135 = vmatpush3.bf16.msra.mxu1 %v2134_v58  ;;  %697 = vmatprep.mubr.f32.mxu1 %v125_v59  ;;  %v251_v57 = vld [vmem:[#allocation7 + $0x178] sm:$0xff]  ;;  %v2120_v58 = vpack.c.bf16 %v267_v48, %v266_v47  ;;  %v2152_v59 = vpack.c.bf16 %v299_v50, %v298_v49  ;;  %v348_v0 = vld [vmem:[#allocation7 + $0x480] sm:$0xff]  ;;  %v349_v1 = vld [vmem:[#allocation7 + $0x488] sm:$0xff] }
  0x77   :  { %2105 = vmatprep.subr.bf16.mxu0 %v2104_v62  ;;  %2137 = vmatprep.subr.bf16.mxu1 %v2136_v63  ;;  %v283_v61 = vld [vmem:[#allocation7 + $0x278] sm:$0xff]  ;;  %v316_v62 = vld [vmem:[#allocation7 + $0x380] sm:$0xff]  ;;  %v317_v63 = vld [vmem:[#allocation7 + $0x388] sm:$0xff]  ;;  %v2122_v2 = vpack.c.bf16 %v251_v57, %v250_v56 }
  0x78   :  { %2020 = vmatprep.mubr.msk.f32.mxu0 %vm484_vm0, %v464_v8  ;;  %v79_v3 = vld [vmem:[#allocation2 + $0x18] sm:$0xff]  ;;  %v188_v4 = vld [vmem:[#allocation2 + $0x380] sm:$0xff]  ;;  %v2154_v5 = vpack.c.bf16 %v283_v61, %v282_v60  ;;  %v81_v8 = vld [vmem:[#allocation2 + $0x28] sm:$0xff] }
  0x79   :  { %698 = vmatmul.mubr.f32.gmra.mrb[6].mxu1 %v124_v6  ;;  %2107 = vmatpush3.bf16.msra.mxu0 %v2106_v7  ;;  %v300_v6 = vld [vmem:[#allocation7 + $0x300] sm:$0xff]  ;;  %v301_v7 = vld [vmem:[#allocation7 + $0x308] sm:$0xff]  ;;  %v78_v15 = vld [vmem:[#allocation2 + $0x10] sm:$0xff] }
  0x7a   :  { %2139 = vmatpush3.bf16.msra.mxu1 %v2138_v9  ;;  %702 = vmatprep.mubr.f32.mxu1 %v141_v10  ;;  %v2156_v9 = vpack.c.bf16 %v317_v63, %v316_v62  ;;  %v2188_v10 = vpack.c.bf16 %v349_v1, %v348_v0  ;;  %v332_v11 = vld [vmem:[#allocation7 + $0x400] sm:$0xff]  ;;  %v333_v12 = vld [vmem:[#allocation7 + $0x408] sm:$0xff]  ;;  %v2158_v16 = vpack.c.bf16 %v301_v7, %v300_v6  ;;  %v350_v17 = vld [vmem:[#allocation7 + $0x490] sm:$0xff] }
  0x7b   :  { %2109 = vmatprep.subr.bf16.mxu0 %v2108_v13  ;;  %2141 = vmatprep.subr.bf16.mxu1 %v2140_v14  ;;  %v318_v13 = vld [vmem:[#allocation7 + $0x390] sm:$0xff]  ;;  %v319_v14 = vld [vmem:[#allocation7 + $0x398] sm:$0xff]  ;;  %v80_v19 = vld [vmem:[#allocation2 + $0x20] sm:$0xff]  ;;  %v2190_v20 = vpack.c.bf16 %v333_v12, %v332_v11 }
  0x7c   :  { %2021 = vmatmul.mubr.msk.f32.gmra.mrb[4].mxu0 %vm484_vm0, %v465_v23  ;;  %v351_v18 = vld [vmem:[#allocation7 + $0x498] sm:$0xff]  ;;  %v97_v27 = vld [vmem:[#allocation2 + $0xa8] sm:$0xff]  ;;  %v94_v31 = vld [vmem:[#allocation2 + $0x90] sm:$0xff] }
  0x7d   :  { %703 = vmatmul.mubr.f32.gmra.mrb[8].mxu1 %v140_v21  ;;  %2111 = vmatpush3.bf16.msra.mxu0 %v2110_v22  ;;  %v302_v21 = vld [vmem:[#allocation7 + $0x310] sm:$0xff]  ;;  %v303_v22 = vld [vmem:[#allocation7 + $0x318] sm:$0xff]  ;;  %v321_v30 = vld [vmem:[#allocation7 + $0x3a8] sm:$0xff] }
  0x7e   :  { %2143 = vmatpush3.bf16.msra.mxu1 %v2142_v24  ;;  %707 = vmatprep.mubr.f32.mxu1 %v157_v25  ;;  %v95_v23 = vld [vmem:[#allocation2 + $0x98] sm:$0xff]  ;;  %v2160_v24 = vpack.c.bf16 %v319_v14, %v318_v13  ;;  %v334_v25 = vld [vmem:[#allocation7 + $0x410] sm:$0xff]  ;;  %v2162_v32 = vpack.c.bf16 %v303_v22, %v302_v21  ;;  %v352_v33 = vld [vmem:[#allocation7 + $0x4a0] sm:$0xff] }
  0x7f   :  { %2113 = vmatprep.subr.bf16.mxu0 %v2112_v28  ;;  %2145 = vmatprep.subr.bf16.mxu1 %v2144_v29  ;;  %v335_v26 = vld [vmem:[#allocation7 + $0x418] sm:$0xff]  ;;  %v2192_v28 = vpack.c.bf16 %v351_v18, %v350_v17  ;;  %v320_v29 = vld [vmem:[#allocation7 + $0x3a0] sm:$0xff]  ;;  %v353_v34 = vld [vmem:[#allocation7 + $0x4a8] sm:$0xff] }
  0x80   :  { %2023 = vmatprep.mubr.msk.f32.mxu0 %vm484_vm0, %v466_v38  ;;  %v96_v35 = vld [vmem:[#allocation2 + $0xa0] sm:$0xff]  ;;  %v305_v38 = vld [vmem:[#allocation7 + $0x328] sm:$0xff]  ;;  %v322_v45 = vld [vmem:[#allocation7 + $0x3b0] sm:$0xff] }
  0x81   :  { %708 = vmatmul.mubr.f32.gmra.mrb[10].mxu1 %v156_v36  ;;  %2115 = vmatpush3.bf16.msra.mxu0 %v2114_v37  ;;  %v2194_v36 = vpack.c.bf16 %v335_v26, %v334_v25  ;;  %v304_v37 = vld [vmem:[#allocation7 + $0x320] sm:$0xff]  ;;  %v337_v42 = vld [vmem:[#allocation7 + $0x428] sm:$0xff]  ;;  %v323_v46 = vld [vmem:[#allocation7 + $0x3b8] sm:$0xff] }
  0x82   :  { %2147 = vmatpush3.bf16.msra.mxu1 %v2146_v39  ;;  %712 = vmatprep.mubr.f32.mxu1 %v173_v40  ;;  %v111_v39 = vld [vmem:[#allocation2 + $0x118] sm:$0xff]  ;;  %v2164_v40 = vpack.c.bf16 %v321_v30, %v320_v29  ;;  %v336_v41 = vld [vmem:[#allocation7 + $0x420] sm:$0xff]  ;;  %v110_v47 = vld [vmem:[#allocation2 + $0x110] sm:$0xff]  ;;  %v2166_v48 = vpack.c.bf16 %v305_v38, %v304_v37  ;;  %v2168_v56 = vpack.c.bf16 %v323_v46, %v322_v45 }
  0x83   :  { %2117 = vmatprep.subr.bf16.mxu0 %v2116_v43  ;;  %2149 = vmatprep.subr.bf16.mxu1 %v2148_v44  ;;  %v113_v43 = vld [vmem:[#allocation2 + $0x128] sm:$0xff]  ;;  %v2196_v44 = vpack.c.bf16 %v353_v34, %v352_v33  ;;  %v354_v49 = vld [vmem:[#allocation7 + $0x4b0] sm:$0xff]  ;;  %v355_v50 = vld [vmem:[#allocation7 + $0x4b8] sm:$0xff] }
  0x84   :  { %2024 = vmatmul.mubr.msk.f32.gmra.mrb[6].mxu0 %vm484_vm0, %v467_v53  ;;  %v306_v53 = vld [vmem:[#allocation7 + $0x330] sm:$0xff]  ;;  %v2200_v60 = vpack.c.bf16 %v355_v50, %v354_v49  ;;  %v324_v61 = vld [vmem:[#allocation7 + $0x3c0] sm:$0xff]  ;;  %v325_v62 = vld [vmem:[#allocation7 + $0x3c8] sm:$0xff] }
  0x85   :  { %713 = vmatmul.mubr.f32.gmra.mrb[12].mxu1 %v172_v51  ;;  %2119 = vmatpush3.bf16.msra.mxu0 %v2118_v52  ;;  %v112_v51 = vld [vmem:[#allocation2 + $0x120] sm:$0xff]  ;;  %v2198_v52 = vpack.c.bf16 %v337_v42, %v336_v41  ;;  %v338_v57 = vld [vmem:[#allocation7 + $0x430] sm:$0xff]  ;;  %v309_v6 = vld [vmem:[#allocation7 + $0x348] sm:$0xff] }
  0x86   :  { %2151 = vmatpush3.bf16.msra.mxu1 %v2150_v54  ;;  %717 = vmatprep.mubr.f32.mxu1 %v189_v55  ;;  %v307_v54 = vld [vmem:[#allocation7 + $0x338] sm:$0xff]  ;;  %v126_v63 = vld [vmem:[#allocation2 + $0x190] sm:$0xff]  ;;  %v356_v1 = vld [vmem:[#allocation7 + $0x4c0] sm:$0xff] }
  0x87   :  { %2121 = vmatprep.subr.bf16.mxu0 %v2120_v58  ;;  %2153 = vmatprep.subr.bf16.mxu1 %v2152_v59  ;;  %v127_v55 = vld [vmem:[#allocation2 + $0x198] sm:$0xff]  ;;  %v129_v59 = vld [vmem:[#allocation2 + $0x1a8] sm:$0xff]  ;;  %v2170_v0 = vpack.c.bf16 %v307_v54, %v306_v53  ;;  %v326_v13 = vld [vmem:[#allocation7 + $0x3d0] sm:$0xff] }
  0x88   :  { %787 = vmatprep.mubr.f32.mxu0 %v79_v3  ;;  %v339_v58 = vld [vmem:[#allocation7 + $0x438] sm:$0xff]  ;;  %v128_v3 = vld [vmem:[#allocation2 + $0x1a0] sm:$0xff]  ;;  %v145_v11 = vld [vmem:[#allocation2 + $0x228] sm:$0xff] }
  0x89   :  { %718 = vmatmul.mubr.f32.gmra.mrb[14].mxu1 %v188_v4  ;;  %2123 = vmatpush3.bf16.msra.mxu0 %v2122_v2  ;;  %v357_v2 = vld [vmem:[#allocation7 + $0x4c8] sm:$0xff]  ;;  %v2202_v4 = vpack.c.bf16 %v339_v58, %v338_v57  ;;  %v143_v7 = vld [vmem:[#allocation2 + $0x218] sm:$0xff]  ;;  %v358_v17 = vld [vmem:[#allocation7 + $0x4d0] sm:$0xff] }
  0x8a   :  { %2155 = vmatpush3.bf16.msra.mxu1 %v2154_v5  ;;  %892 = vmatprep.mubr.f32.mxu1 %v81_v8  ;;  %v308_v5 = vld [vmem:[#allocation7 + $0x340] sm:$0xff]  ;;  %v2172_v8 = vpack.c.bf16 %v325_v62, %v324_v61  ;;  %v2204_v12 = vpack.c.bf16 %v357_v2, %v356_v1  ;;  %v327_v14 = vld [vmem:[#allocation7 + $0x3d8] sm:$0xff]  ;;  %v310_v21 = vld [vmem:[#allocation7 + $0x350] sm:$0xff] }
  0x8b   :  { %2157 = vmatprep.subr.bf16.mxu0 %v2156_v9  ;;  %2189 = vmatprep.subr.bf16.mxu1 %v2188_v10  ;;  %v340_v9 = vld [vmem:[#allocation7 + $0x440] sm:$0xff]  ;;  %v341_v10 = vld [vmem:[#allocation7 + $0x448] sm:$0xff]  ;;  %v359_v18 = vld [vmem:[#allocation7 + $0x4d8] sm:$0xff] }
  0x8c   :  { %788 = vmatmul.mubr.f32.vlgmr.msra.gmra.mrb[8].mxu0 %v78_v15  ;;  %v142_v15 = vld [vmem:[#allocation2 + $0x210] sm:$0xff]  ;;  %v311_v22 = vld [vmem:[#allocation7 + $0x358] sm:$0xff]  ;;  %v328_v29 = vld [vmem:[#allocation7 + $0x3e0] sm:$0xff] }
  0x8d   :  { %893 = vmatmul.mubr.f32.vlgmr.msra.gmra.mrb[16].mxu1 %v80_v19  ;;  %2159 = vmatpush3.bf16.msra.mxu0 %v2158_v16  ;;  %v2174_v16 = vpack.c.bf16 %v309_v6, %v308_v5  ;;  %v144_v19 = vld [vmem:[#allocation2 + $0x220] sm:$0xff]  ;;  %v342_v25 = vld [vmem:[#allocation7 + $0x450] sm:$0xff]  ;;  %v343_v26 = vld [vmem:[#allocation7 + $0x458] sm:$0xff] }
  0x8e   :  { %2191 = vmatpush3.bf16.msra.mxu1 %v2190_v20  ;;  %792 = vmatprep.mubr.f32.mxu0 %v95_v23  ;;  %v2206_v20 = vpack.c.bf16 %v341_v10, %v340_v9  ;;  %v159_v23 = vld [vmem:[#allocation2 + $0x298] sm:$0xff]  ;;  %v329_v30 = vld [vmem:[#allocation7 + $0x3e8] sm:$0xff]  ;;  %v360_v33 = vld [vmem:[#allocation7 + $0x4e0] sm:$0xff] }
  0x8f   :  { %897 = vmatprep.mubr.f32.mxu1 %v97_v27  ;;  %2161 = vmatprep.subr.bf16.mxu0 %v2160_v24  ;;  %v2176_v24 = vpack.c.bf16 %v327_v14, %v326_v13  ;;  %v161_v27 = vld [vmem:[#allocation2 + $0x2a8] sm:$0xff]  ;;  %v312_v37 = vld [vmem:[#allocation7 + $0x360] sm:$0xff]  ;;  %v330_v45 = vld [vmem:[#allocation7 + $0x3f0] sm:$0xff] }
  0x90   :  { %793 = vmatmul.mubr.f32.gmra.mrb[10].mxu0 %v94_v31  ;;  %2193 = vmatprep.subr.bf16.mxu1 %v2192_v28  ;;  %v2208_v28 = vpack.c.bf16 %v359_v18, %v358_v17  ;;  %v158_v31 = vld [vmem:[#allocation2 + $0x290] sm:$0xff]  ;;  %v361_v34 = vld [vmem:[#allocation7 + $0x4e8] sm:$0xff]  ;;  %v344_v41 = vld [vmem:[#allocation7 + $0x460] sm:$0xff] }
  0x91   :  { %898 = vmatmul.mubr.f32.gmra.mrb[18].mxu1 %v96_v35  ;;  %2163 = vmatpush3.bf16.msra.mxu0 %v2162_v32  ;;  %v2178_v32 = vpack.c.bf16 %v311_v22, %v310_v21  ;;  %v160_v35 = vld [vmem:[#allocation2 + $0x2a0] sm:$0xff]  ;;  %v313_v38 = vld [vmem:[#allocation7 + $0x368] sm:$0xff]  ;;  %v331_v46 = vld [vmem:[#allocation7 + $0x3f8] sm:$0xff] }
  0x92   :  { %2195 = vmatpush3.bf16.msra.mxu1 %v2194_v36  ;;  %797 = vmatprep.mubr.f32.mxu0 %v111_v39  ;;  %v2210_v36 = vpack.c.bf16 %v343_v26, %v342_v25  ;;  %v175_v39 = vld [vmem:[#allocation2 + $0x318] sm:$0xff]  ;;  %v345_v42 = vld [vmem:[#allocation7 + $0x468] sm:$0xff]  ;;  %v362_v49 = vld [vmem:[#allocation7 + $0x4f0] sm:$0xff] }
  0x93   :  { %902 = vmatprep.mubr.f32.mxu1 %v113_v43  ;;  %2165 = vmatprep.subr.bf16.mxu0 %v2164_v40  ;;  %v2180_v40 = vpack.c.bf16 %v329_v30, %v328_v29  ;;  %v177_v43 = vld [vmem:[#allocation2 + $0x328] sm:$0xff]  ;;  %v363_v50 = vld [vmem:[#allocation7 + $0x4f8] sm:$0xff]  ;;  %v314_v53 = vld [vmem:[#allocation7 + $0x370] sm:$0xff] }
  0x94   :  { %798 = vmatmul.mubr.f32.gmra.mrb[12].mxu0 %v110_v47  ;;  %2197 = vmatprep.subr.bf16.mxu1 %v2196_v44  ;;  %v2212_v44 = vpack.c.bf16 %v361_v34, %v360_v33  ;;  %v174_v47 = vld [vmem:[#allocation2 + $0x310] sm:$0xff]  ;;  %v315_v54 = vld [vmem:[#allocation7 + $0x378] sm:$0xff]  ;;  %v380_v61 = vld [vmem:[#allocation7 + $0x580] sm:$0xff] }
  0x95   :  { %903 = vmatmul.mubr.f32.gmra.mrb[20].mxu1 %v112_v51  ;;  %2167 = vmatpush3.bf16.msra.mxu0 %v2166_v48  ;;  %v2182_v48 = vpack.c.bf16 %v313_v38, %v312_v37  ;;  %v176_v51 = vld [vmem:[#allocation2 + $0x320] sm:$0xff]  ;;  %v346_v57 = vld [vmem:[#allocation7 + $0x470] sm:$0xff]  ;;  %v347_v58 = vld [vmem:[#allocation7 + $0x478] sm:$0xff] }
  0x96   :  { %2199 = vmatpush3.bf16.msra.mxu1 %v2198_v52  ;;  %802 = vmatprep.mubr.f32.mxu0 %v127_v55  ;;  %v2214_v52 = vpack.c.bf16 %v345_v42, %v344_v41  ;;  %v191_v55 = vld [vmem:[#allocation2 + $0x398] sm:$0xff]  ;;  %v381_v62 = vld [vmem:[#allocation7 + $0x588] sm:$0xff]  ;;  %v412_v1 = vld [vmem:[#allocation7 + $0x680] sm:$0xff] }
  0x97   :  { %907 = vmatprep.mubr.f32.mxu1 %v129_v59  ;;  %2169 = vmatprep.subr.bf16.mxu0 %v2168_v56  ;;  %v2184_v56 = vpack.c.bf16 %v331_v46, %v330_v45  ;;  %v193_v59 = vld [vmem:[#allocation2 + $0x3a8] sm:$0xff]  ;;  %v364_v5 = vld [vmem:[#allocation7 + $0x500] sm:$0xff]  ;;  %v382_v13 = vld [vmem:[#allocation7 + $0x590] sm:$0xff] }
  0x98   :  { %803 = vmatmul.mubr.f32.gmra.mrb[14].mxu0 %v126_v63  ;;  %2201 = vmatprep.subr.bf16.mxu1 %v2200_v60  ;;  %v2216_v60 = vpack.c.bf16 %v363_v50, %v362_v49  ;;  %v190_v63 = vld [vmem:[#allocation2 + $0x390] sm:$0xff]  ;;  %v413_v2 = vld [vmem:[#allocation7 + $0x688] sm:$0xff]  ;;  %v396_v9 = vld [vmem:[#allocation7 + $0x600] sm:$0xff] }
  0x99   :  { %908 = vmatmul.mubr.f32.gmra.mrb[22].mxu1 %v128_v3  ;;  %2171 = vmatpush3.bf16.msra.mxu0 %v2170_v0  ;;  %v2186_v0 = vpack.c.bf16 %v315_v54, %v314_v53  ;;  %v192_v3 = vld [vmem:[#allocation2 + $0x3a0] sm:$0xff]  ;;  %v365_v6 = vld [vmem:[#allocation7 + $0x508] sm:$0xff]  ;;  %v383_v14 = vld [vmem:[#allocation7 + $0x598] sm:$0xff] }
  0x9a   :  { %2203 = vmatpush3.bf16.msra.mxu1 %v2202_v4  ;;  %807 = vmatprep.mubr.f32.mxu0 %v143_v7  ;;  %v2218_v4 = vpack.c.bf16 %v347_v58, %v346_v57  ;;  %v83_v7 = vld [vmem:[#allocation2 + $0x38] sm:$0xff]  ;;  %v397_v10 = vld [vmem:[#allocation7 + $0x608] sm:$0xff]  ;;  %v414_v17 = vld [vmem:[#allocation7 + $0x690] sm:$0xff] }
  0x9b   :  { %912 = vmatprep.mubr.f32.mxu1 %v145_v11  ;;  %2173 = vmatprep.subr.bf16.mxu0 %v2172_v8  ;;  %v2220_v8 = vpack.c.bf16 %v381_v62, %v380_v61  ;;  %v85_v11 = vld [vmem:[#allocation2 + $0x48] sm:$0xff]  ;;  %v415_v18 = vld [vmem:[#allocation7 + $0x698] sm:$0xff]  ;;  %v366_v21 = vld [vmem:[#allocation7 + $0x510] sm:$0xff] }
  0x9c   :  { %808 = vmatmul.mubr.f32.gmra.mrb[16].mxu0 %v142_v15  ;;  %2205 = vmatprep.subr.bf16.mxu1 %v2204_v12  ;;  %v2252_v12 = vpack.c.bf16 %v413_v2, %v412_v1  ;;  %v82_v15 = vld [vmem:[#allocation2 + $0x30] sm:$0xff]  ;;  %v367_v22 = vld [vmem:[#allocation7 + $0x518] sm:$0xff]  ;;  %v384_v29 = vld [vmem:[#allocation7 + $0x5a0] sm:$0xff] }
  0x9d   :  { %913 = vmatmul.mubr.f32.gmra.mrb[24].mxu1 %v144_v19  ;;  %2175 = vmatpush3.bf16.msra.mxu0 %v2174_v16  ;;  %v2222_v16 = vpack.c.bf16 %v365_v6, %v364_v5  ;;  %v84_v19 = vld [vmem:[#allocation2 + $0x40] sm:$0xff]  ;;  %v398_v25 = vld [vmem:[#allocation7 + $0x610] sm:$0xff]  ;;  %v399_v26 = vld [vmem:[#allocation7 + $0x618] sm:$0xff] }
  0x9e   :  { %2207 = vmatpush3.bf16.msra.mxu1 %v2206_v20  ;;  %812 = vmatprep.mubr.f32.mxu0 %v159_v23  ;;  %v2254_v20 = vpack.c.bf16 %v397_v10, %v396_v9  ;;  %v99_v23 = vld [vmem:[#allocation2 + $0xb8] sm:$0xff]  ;;  %v385_v30 = vld [vmem:[#allocation7 + $0x5a8] sm:$0xff]  ;;  %v416_v33 = vld [vmem:[#allocation7 + $0x6a0] sm:$0xff] }
  0x9f   :  { %917 = vmatprep.mubr.f32.mxu1 %v161_v27  ;;  %2177 = vmatprep.subr.bf16.mxu0 %v2176_v24  ;;  %v2224_v24 = vpack.c.bf16 %v383_v14, %v382_v13  ;;  %v101_v27 = vld [vmem:[#allocation2 + $0xc8] sm:$0xff]  ;;  %v368_v37 = vld [vmem:[#allocation7 + $0x520] sm:$0xff]  ;;  %v386_v45 = vld [vmem:[#allocation7 + $0x5b0] sm:$0xff] }
  0xa0   :  { %813 = vmatmul.mubr.f32.gmra.mrb[18].mxu0 %v158_v31  ;;  %2209 = vmatprep.subr.bf16.mxu1 %v2208_v28  ;;  %v2256_v28 = vpack.c.bf16 %v415_v18, %v414_v17  ;;  %v98_v31 = vld [vmem:[#allocation2 + $0xb0] sm:$0xff]  ;;  %v417_v34 = vld [vmem:[#allocation7 + $0x6a8] sm:$0xff]  ;;  %v400_v41 = vld [vmem:[#allocation7 + $0x620] sm:$0xff] }
  0xa1   :  { %918 = vmatmul.mubr.f32.gmra.mrb[26].mxu1 %v160_v35  ;;  %2179 = vmatpush3.bf16.msra.mxu0 %v2178_v32  ;;  %v2226_v32 = vpack.c.bf16 %v367_v22, %v366_v21  ;;  %v100_v35 = vld [vmem:[#allocation2 + $0xc0] sm:$0xff]  ;;  %v369_v38 = vld [vmem:[#allocation7 + $0x528] sm:$0xff]  ;;  %v387_v46 = vld [vmem:[#allocation7 + $0x5b8] sm:$0xff] }
  0xa2   :  { %2211 = vmatpush3.bf16.msra.mxu1 %v2210_v36  ;;  %817 = vmatprep.mubr.f32.mxu0 %v175_v39  ;;  %v2258_v36 = vpack.c.bf16 %v399_v26, %v398_v25  ;;  %v115_v39 = vld [vmem:[#allocation2 + $0x138] sm:$0xff]  ;;  %v401_v42 = vld [vmem:[#allocation7 + $0x628] sm:$0xff]  ;;  %v418_v49 = vld [vmem:[#allocation7 + $0x6b0] sm:$0xff] }
  0xa3   :  { %922 = vmatprep.mubr.f32.mxu1 %v177_v43  ;;  %2181 = vmatprep.subr.bf16.mxu0 %v2180_v40  ;;  %v2228_v40 = vpack.c.bf16 %v385_v30, %v384_v29  ;;  %v117_v43 = vld [vmem:[#allocation2 + $0x148] sm:$0xff]  ;;  %v419_v50 = vld [vmem:[#allocation7 + $0x6b8] sm:$0xff]  ;;  %v370_v53 = vld [vmem:[#allocation7 + $0x530] sm:$0xff] }
  0xa4   :  { %818 = vmatmul.mubr.f32.gmra.mrb[20].mxu0 %v174_v47  ;;  %2213 = vmatprep.subr.bf16.mxu1 %v2212_v44  ;;  %v2260_v44 = vpack.c.bf16 %v417_v34, %v416_v33  ;;  %v114_v47 = vld [vmem:[#allocation2 + $0x130] sm:$0xff]  ;;  %v371_v54 = vld [vmem:[#allocation7 + $0x538] sm:$0xff]  ;;  %v388_v61 = vld [vmem:[#allocation7 + $0x5c0] sm:$0xff] }
  0xa5   :  { %923 = vmatmul.mubr.f32.gmra.mrb[28].mxu1 %v176_v51  ;;  %2183 = vmatpush3.bf16.msra.mxu0 %v2182_v48  ;;  %v2230_v48 = vpack.c.bf16 %v369_v38, %v368_v37  ;;  %v116_v51 = vld [vmem:[#allocation2 + $0x140] sm:$0xff]  ;;  %v402_v57 = vld [vmem:[#allocation7 + $0x630] sm:$0xff]  ;;  %v403_v58 = vld [vmem:[#allocation7 + $0x638] sm:$0xff] }
  0xa6   :  { %2215 = vmatpush3.bf16.msra.mxu1 %v2214_v52  ;;  %822 = vmatprep.mubr.f32.mxu0 %v191_v55  ;;  %v2262_v52 = vpack.c.bf16 %v401_v42, %v400_v41  ;;  %v131_v55 = vld [vmem:[#allocation2 + $0x1b8] sm:$0xff]  ;;  %v389_v62 = vld [vmem:[#allocation7 + $0x5c8] sm:$0xff]  ;;  %v420_v1 = vld [vmem:[#allocation7 + $0x6c0] sm:$0xff] }
  0xa7   :  { %927 = vmatprep.mubr.f32.mxu1 %v193_v59  ;;  %2185 = vmatprep.subr.bf16.mxu0 %v2184_v56  ;;  %v2232_v56 = vpack.c.bf16 %v387_v46, %v386_v45  ;;  %v133_v59 = vld [vmem:[#allocation2 + $0x1c8] sm:$0xff]  ;;  %v372_v5 = vld [vmem:[#allocation7 + $0x540] sm:$0xff]  ;;  %v390_v13 = vld [vmem:[#allocation7 + $0x5d0] sm:$0xff] }
  0xa8   :  { %823 = vmatmul.mubr.f32.gmra.mrb[22].mxu0 %v190_v63  ;;  %2217 = vmatprep.subr.bf16.mxu1 %v2216_v60  ;;  %v2264_v60 = vpack.c.bf16 %v419_v50, %v418_v49  ;;  %v130_v63 = vld [vmem:[#allocation2 + $0x1b0] sm:$0xff]  ;;  %v421_v2 = vld [vmem:[#allocation7 + $0x6c8] sm:$0xff]  ;;  %v404_v9 = vld [vmem:[#allocation7 + $0x640] sm:$0xff] }
  0xa9   :  { %928 = vmatmul.mubr.f32.gmra.mrb[30].mxu1 %v192_v3  ;;  %2187 = vmatpush3.bf16.msra.mxu0 %v2186_v0  ;;  %v2234_v0 = vpack.c.bf16 %v371_v54, %v370_v53  ;;  %v132_v3 = vld [vmem:[#allocation2 + $0x1c0] sm:$0xff]  ;;  %v373_v6 = vld [vmem:[#allocation7 + $0x548] sm:$0xff]  ;;  %v391_v14 = vld [vmem:[#allocation7 + $0x5d8] sm:$0xff] }
  0xaa   :  { %2219 = vmatpush3.bf16.msra.mxu1 %v2218_v4  ;;  %997 = vmatprep.mubr.f32.mxu0 %v83_v7  ;;  %v2266_v4 = vpack.c.bf16 %v403_v58, %v402_v57  ;;  %v147_v7 = vld [vmem:[#allocation2 + $0x238] sm:$0xff]  ;;  %v405_v10 = vld [vmem:[#allocation7 + $0x648] sm:$0xff]  ;;  %v422_v17 = vld [vmem:[#allocation7 + $0x6d0] sm:$0xff] }
  0xab   :  { %1102 = vmatprep.mubr.f32.mxu1 %v85_v11  ;;  %2221 = vmatprep.subr.bf16.mxu0 %v2220_v8  ;;  %v2236_v8 = vpack.c.bf16 %v389_v62, %v388_v61  ;;  %v149_v11 = vld [vmem:[#allocation2 + $0x248] sm:$0xff]  ;;  %v423_v18 = vld [vmem:[#allocation7 + $0x6d8] sm:$0xff]  ;;  %v374_v21 = vld [vmem:[#allocation7 + $0x550] sm:$0xff] }
  0xac   :  { %998 = vmatmul.mubr.f32.vlgmr.msra.gmra.mrb[24].mxu0 %v82_v15  ;;  %2253 = vmatprep.subr.bf16.mxu1 %v2252_v12  ;;  %v2268_v12 = vpack.c.bf16 %v421_v2, %v420_v1  ;;  %v146_v15 = vld [vmem:[#allocation2 + $0x230] sm:$0xff]  ;;  %v375_v22 = vld [vmem:[#allocation7 + $0x558] sm:$0xff]  ;;  %v392_v29 = vld [vmem:[#allocation7 + $0x5e0] sm:$0xff] }
  0xad   :  { %1103 = vmatmul.mubr.f32.vlgmr.msra.gmra.mrb[32].mxu1 %v84_v19  ;;  %2223 = vmatpush3.bf16.msra.mxu0 %v2222_v16  ;;  %v2238_v16 = vpack.c.bf16 %v373_v6, %v372_v5  ;;  %v148_v19 = vld [vmem:[#allocation2 + $0x240] sm:$0xff]  ;;  %v406_v25 = vld [vmem:[#allocation7 + $0x650] sm:$0xff]  ;;  %v407_v26 = vld [vmem:[#allocation7 + $0x658] sm:$0xff] }
  0xae   :  { %2255 = vmatpush3.bf16.msra.mxu1 %v2254_v20  ;;  %1002 = vmatprep.mubr.f32.mxu0 %v99_v23  ;;  %v2270_v20 = vpack.c.bf16 %v405_v10, %v404_v9  ;;  %v163_v23 = vld [vmem:[#allocation2 + $0x2b8] sm:$0xff]  ;;  %v393_v30 = vld [vmem:[#allocation7 + $0x5e8] sm:$0xff]  ;;  %v424_v33 = vld [vmem:[#allocation7 + $0x6e0] sm:$0xff] }
  0xaf   :  { %1107 = vmatprep.mubr.f32.mxu1 %v101_v27  ;;  %2225 = vmatprep.subr.bf16.mxu0 %v2224_v24  ;;  %v2240_v24 = vpack.c.bf16 %v391_v14, %v390_v13  ;;  %v165_v27 = vld [vmem:[#allocation2 + $0x2c8] sm:$0xff]  ;;  %v376_v37 = vld [vmem:[#allocation7 + $0x560] sm:$0xff]  ;;  %v394_v45 = vld [vmem:[#allocation7 + $0x5f0] sm:$0xff] }
  0xb0   :  { %1003 = vmatmul.mubr.f32.gmra.mrb[26].mxu0 %v98_v31  ;;  %2257 = vmatprep.subr.bf16.mxu1 %v2256_v28  ;;  %v2272_v28 = vpack.c.bf16 %v423_v18, %v422_v17  ;;  %v162_v31 = vld [vmem:[#allocation2 + $0x2b0] sm:$0xff]  ;;  %v425_v34 = vld [vmem:[#allocation7 + $0x6e8] sm:$0xff]  ;;  %v408_v41 = vld [vmem:[#allocation7 + $0x660] sm:$0xff] }
  0xb1   :  { %1108 = vmatmul.mubr.f32.gmra.mrb[34].mxu1 %v100_v35  ;;  %2227 = vmatpush3.bf16.msra.mxu0 %v2226_v32  ;;  %v2242_v32 = vpack.c.bf16 %v375_v22, %v374_v21  ;;  %v164_v35 = vld [vmem:[#allocation2 + $0x2c0] sm:$0xff]  ;;  %v377_v38 = vld [vmem:[#allocation7 + $0x568] sm:$0xff]  ;;  %v395_v46 = vld [vmem:[#allocation7 + $0x5f8] sm:$0xff] }
  0xb2   :  { %2259 = vmatpush3.bf16.msra.mxu1 %v2258_v36  ;;  %1007 = vmatprep.mubr.f32.mxu0 %v115_v39  ;;  %v2274_v36 = vpack.c.bf16 %v407_v26, %v406_v25  ;;  %v179_v39 = vld [vmem:[#allocation2 + $0x338] sm:$0xff]  ;;  %v409_v42 = vld [vmem:[#allocation7 + $0x668] sm:$0xff]  ;;  %v426_v49 = vld [vmem:[#allocation7 + $0x6f0] sm:$0xff] }
  0xb3   :  { %1112 = vmatprep.mubr.f32.mxu1 %v117_v43  ;;  %2229 = vmatprep.subr.bf16.mxu0 %v2228_v40  ;;  %v2244_v40 = vpack.c.bf16 %v393_v30, %v392_v29  ;;  %v181_v43 = vld [vmem:[#allocation2 + $0x348] sm:$0xff]  ;;  %v427_v50 = vld [vmem:[#allocation7 + $0x6f8] sm:$0xff]  ;;  %v378_v53 = vld [vmem:[#allocation7 + $0x570] sm:$0xff] }
  0xb4   :  { %1008 = vmatmul.mubr.f32.gmra.mrb[28].mxu0 %v114_v47  ;;  %2261 = vmatprep.subr.bf16.mxu1 %v2260_v44  ;;  %v2276_v44 = vpack.c.bf16 %v425_v34, %v424_v33  ;;  %v178_v47 = vld [vmem:[#allocation2 + $0x330] sm:$0xff]  ;;  %v379_v54 = vld [vmem:[#allocation7 + $0x578] sm:$0xff]  ;;  %v444_v61 = vld [vmem:[#allocation7 + $0x780] sm:$0xff] }
  0xb5   :  { %1113 = vmatmul.mubr.f32.gmra.mrb[36].mxu1 %v116_v51  ;;  %2231 = vmatpush3.bf16.msra.mxu0 %v2230_v48  ;;  %v2246_v48 = vpack.c.bf16 %v377_v38, %v376_v37  ;;  %v180_v51 = vld [vmem:[#allocation2 + $0x340] sm:$0xff]  ;;  %v410_v57 = vld [vmem:[#allocation7 + $0x670] sm:$0xff]  ;;  %v411_v58 = vld [vmem:[#allocation7 + $0x678] sm:$0xff] }
  0xb6   :  { %2263 = vmatpush3.bf16.msra.mxu1 %v2262_v52  ;;  %1012 = vmatprep.mubr.f32.mxu0 %v131_v55  ;;  %v2278_v52 = vpack.c.bf16 %v409_v42, %v408_v41  ;;  %v195_v55 = vld [vmem:[#allocation2 + $0x3b8] sm:$0xff]  ;;  %v445_v62 = vld [vmem:[#allocation7 + $0x788] sm:$0xff]  ;;  %v196_v1 = vld [vmem:[#allocation2 + $0x3c0] sm:$0xff]  ;;  %v2282_v2 = vpack.c.bf16 %v411_v58, %v410_v57 }
  0xb7   :  { %1117 = vmatprep.mubr.f32.mxu1 %v133_v59  ;;  %2233 = vmatprep.subr.bf16.mxu0 %v2232_v56  ;;  %v2248_v56 = vpack.c.bf16 %v395_v46, %v394_v45  ;;  %v197_v59 = vld [vmem:[#allocation2 + $0x3c8] sm:$0xff]  ;;  %v87_v5 = vld [vmem:[#allocation2 + $0x58] sm:$0xff]  ;;  %v2284_v6 = vpack.c.bf16 %v445_v62, %v444_v61  ;;  %v86_v10 = vld [vmem:[#allocation2 + $0x50] sm:$0xff] }
  0xb8   :  { %1013 = vmatmul.mubr.f32.gmra.mrb[30].mxu0 %v130_v63  ;;  %2265 = vmatprep.subr.bf16.mxu1 %v2264_v60  ;;  %v2280_v60 = vpack.c.bf16 %v427_v50, %v426_v49  ;;  %v194_v63 = vld [vmem:[#allocation2 + $0x3b0] sm:$0xff]  ;;  %v447_v9 = vld [vmem:[#allocation7 + $0x798] sm:$0xff]  ;;  %v105_v17 = vld [vmem:[#allocation2 + $0xe8] sm:$0xff] }
  0xb9   :  { %1118 = vmatmul.mubr.f32.gmra.mrb[38].mxu1 %v132_v3  ;;  %2235 = vmatpush3.bf16.msra.mxu0 %v2234_v0  ;;  %v2250_v0 = vpack.c.bf16 %v379_v54, %v378_v53  ;;  %v428_v3 = vld [vmem:[#allocation7 + $0x700] sm:$0xff]  ;;  %v430_v13 = vld [vmem:[#allocation7 + $0x710] sm:$0xff]  ;;  %v431_v14 = vld [vmem:[#allocation7 + $0x718] sm:$0xff] }
  0xba   :  { %2267 = vmatpush3.bf16.msra.mxu1 %v2266_v4  ;;  %1017 = vmatprep.mubr.f32.mxu0 %v147_v7  ;;  %v429_v4 = vld [vmem:[#allocation7 + $0x708] sm:$0xff]  ;;  %v448_v18 = vld [vmem:[#allocation7 + $0x7a0] sm:$0xff]  ;;  %v2290_v21 = vpack.c.bf16 %v431_v14, %v430_v13  ;;  %v119_v25 = vld [vmem:[#allocation2 + $0x158] sm:$0xff] }
  0xbb   :  { %1122 = vmatprep.mubr.f32.mxu1 %v149_v11  ;;  %2237 = vmatprep.subr.bf16.mxu0 %v2236_v8  ;;  %v89_v7 = vld [vmem:[#allocation2 + $0x68] sm:$0xff]  ;;  %v446_v8 = vld [vmem:[#allocation7 + $0x790] sm:$0xff]  ;;  %v2286_v11 = vpack.c.bf16 %v429_v4, %v428_v3  ;;  %v104_v22 = vld [vmem:[#allocation2 + $0xe0] sm:$0xff] }
  0xbc   :  { %1018 = vmatmul.mubr.f32.gmra.mrb[32].mxu0 %v146_v15  ;;  %2269 = vmatprep.subr.bf16.mxu1 %v2268_v12  ;;  %v88_v12 = vld [vmem:[#allocation2 + $0x60] sm:$0xff]  ;;  %v103_v15 = vld [vmem:[#allocation2 + $0xd8] sm:$0xff]  ;;  %v118_v30 = vld [vmem:[#allocation2 + $0x150] sm:$0xff] }
  0xbd   :  { %1123 = vmatmul.mubr.f32.gmra.mrb[40].mxu1 %v148_v19  ;;  %2239 = vmatpush3.bf16.msra.mxu0 %v2238_v16  ;;  %v2288_v16 = vpack.c.bf16 %v447_v9, %v446_v8  ;;  %v449_v19 = vld [vmem:[#allocation7 + $0x7a8] sm:$0xff]  ;;  %v451_v29 = vld [vmem:[#allocation7 + $0x7b8] sm:$0xff]  ;;  %v434_v33 = vld [vmem:[#allocation7 + $0x730] sm:$0xff] }
  0xbe   :  { %2271 = vmatpush3.bf16.msra.mxu1 %v2270_v20  ;;  %1022 = vmatprep.mubr.f32.mxu0 %v163_v23  ;;  %v102_v20 = vld [vmem:[#allocation2 + $0xd0] sm:$0xff]  ;;  %v432_v23 = vld [vmem:[#allocation7 + $0x720] sm:$0xff]  ;;  %v2292_v26 = vpack.c.bf16 %v449_v19, %v448_v18  ;;  %v435_v34 = vld [vmem:[#allocation7 + $0x738] sm:$0xff] }
  0xbf   :  { %1127 = vmatprep.mubr.f32.mxu1 %v165_v27  ;;  %2241 = vmatprep.subr.bf16.mxu0 %v2240_v24  ;;  %v433_v24 = vld [vmem:[#allocation7 + $0x728] sm:$0xff]  ;;  %v452_v38 = vld [vmem:[#allocation7 + $0x7c0] sm:$0xff]  ;;  %v2298_v41 = vpack.c.bf16 %v435_v34, %v434_v33  ;;  %v151_v45 = vld [vmem:[#allocation2 + $0x258] sm:$0xff] }
  0xc0   :  { %1023 = vmatmul.mubr.f32.gmra.mrb[34].mxu0 %v162_v31  ;;  %2273 = vmatprep.subr.bf16.mxu1 %v2272_v28  ;;  %v121_v27 = vld [vmem:[#allocation2 + $0x168] sm:$0xff]  ;;  %v450_v28 = vld [vmem:[#allocation7 + $0x7b0] sm:$0xff]  ;;  %v2294_v31 = vpack.c.bf16 %v433_v24, %v432_v23  ;;  %v136_v42 = vld [vmem:[#allocation2 + $0x1e0] sm:$0xff] }
  0xc1   :  { %1128 = vmatmul.mubr.f32.gmra.mrb[42].mxu1 %v164_v35  ;;  %2243 = vmatpush3.bf16.msra.mxu0 %v2242_v32  ;;  %v120_v32 = vld [vmem:[#allocation2 + $0x160] sm:$0xff]  ;;  %v135_v35 = vld [vmem:[#allocation2 + $0x1d8] sm:$0xff]  ;;  %v137_v37 = vld [vmem:[#allocation2 + $0x1e8] sm:$0xff] }
  0xc2   :  { %2275 = vmatpush3.bf16.msra.mxu1 %v2274_v36  ;;  %1027 = vmatprep.mubr.f32.mxu0 %v179_v39  ;;  %v2296_v36 = vpack.c.bf16 %v451_v29, %v450_v28  ;;  %v453_v39 = vld [vmem:[#allocation7 + $0x7c8] sm:$0xff]  ;;  %v455_v49 = vld [vmem:[#allocation7 + $0x7d8] sm:$0xff]  ;;  %v150_v50 = vld [vmem:[#allocation2 + $0x250] sm:$0xff] }
  0xc3   :  { %1132 = vmatprep.mubr.f32.mxu1 %v181_v43  ;;  %2245 = vmatprep.subr.bf16.mxu0 %v2244_v40  ;;  %v134_v40 = vld [vmem:[#allocation2 + $0x1d0] sm:$0xff]  ;;  %v436_v43 = vld [vmem:[#allocation7 + $0x740] sm:$0xff]  ;;  %v2300_v46 = vpack.c.bf16 %v453_v39, %v452_v38  ;;  %v439_v54 = vld [vmem:[#allocation7 + $0x758] sm:$0xff] }
  0xc4   :  { %1028 = vmatmul.mubr.f32.gmra.mrb[36].mxu0 %v178_v47  ;;  %2277 = vmatprep.subr.bf16.mxu1 %v2276_v44  ;;  %v437_v44 = vld [vmem:[#allocation7 + $0x748] sm:$0xff]  ;;  %v438_v53 = vld [vmem:[#allocation7 + $0x750] sm:$0xff]  ;;  %v456_v58 = vld [vmem:[#allocation7 + $0x7e0] sm:$0xff] }
  0xc5   :  { %1133 = vmatmul.mubr.f32.gmra.mrb[44].mxu1 %v180_v51  ;;  %2247 = vmatpush3.bf16.msra.mxu0 %v2246_v48  ;;  %v153_v47 = vld [vmem:[#allocation2 + $0x268] sm:$0xff]  ;;  %v454_v48 = vld [vmem:[#allocation7 + $0x7d0] sm:$0xff]  ;;  %v2302_v51 = vpack.c.bf16 %v437_v44, %v436_v43  ;;  %v2306_v61 = vpack.c.bf16 %v439_v54, %v438_v53  ;;  %v168_v62 = vld [vmem:[#allocation2 + $0x2e0] sm:$0xff] }
  0xc6   :  { %2279 = vmatpush3.bf16.msra.mxu1 %v2278_v52  ;;  %1032 = vmatprep.mubr.f32.mxu0 %v195_v55  ;;  %v152_v52 = vld [vmem:[#allocation2 + $0x260] sm:$0xff]  ;;  %v167_v55 = vld [vmem:[#allocation2 + $0x2d8] sm:$0xff]  ;;  %v169_v57 = vld [vmem:[#allocation2 + $0x2e8] sm:$0xff] }
  0xc7   :  { %1137 = vmatprep.mubr.f32.mxu1 %v197_v59  ;;  %2249 = vmatprep.subr.bf16.mxu0 %v2248_v56  ;;  %v2304_v56 = vpack.c.bf16 %v455_v49, %v454_v48  ;;  %v457_v59 = vld [vmem:[#allocation7 + $0x7e8] sm:$0xff]  ;;  %v458_v4 = vld [vmem:[#allocation7 + $0x7f0] sm:$0xff]  ;;  %v184_v8 = vld [vmem:[#allocation2 + $0x360] sm:$0xff] }
  0xc8   :  { %1033 = vmatmul.mubr.f32.gmra.mrb[38].mxu0 %v194_v63  ;;  %2281 = vmatprep.subr.bf16.mxu1 %v2280_v60  ;;  %v166_v60 = vld [vmem:[#allocation2 + $0x2d0] sm:$0xff]  ;;  %v440_v63 = vld [vmem:[#allocation7 + $0x760] sm:$0xff]  ;;  %v185_v3 = vld [vmem:[#allocation2 + $0x368] sm:$0xff] }
  0xc9   :  { %1138 = vmatmul.mubr.f32.gmra.mrb[46].mxu1 %v196_v1  ;;  %2251 = vmatpush3.bf16.msra.mxu0 %v2250_v0  ;;  %v441_v0 = vld [vmem:[#allocation7 + $0x768] sm:$0xff]  ;;  %v183_v1 = vld [vmem:[#allocation2 + $0x358] sm:$0xff]  ;;  %v442_v9 = vld [vmem:[#allocation7 + $0x770] sm:$0xff] }
  0xca   :  { %2283 = vmatpush3.bf16.msra.mxu1 %v2282_v2  ;;  %1207 = vmatprep.mubr.f32.mxu0 %v87_v5  ;;  %v2308_v2 = vpack.c.bf16 %v457_v59, %v456_v58  ;;  %v459_v5 = vld [vmem:[#allocation7 + $0x7f8] sm:$0xff]  ;;  %v201_v13 = vld [vmem:[#allocation2 + $0x3e8] sm:$0xff]  ;;  %v198_v14 = vld [vmem:[#allocation2 + $0x3d0] sm:$0xff] }
  0xcb   :  { %1312 = vmatprep.mubr.f32.mxu1 %v89_v7  ;;  %2285 = vmatprep.subr.bf16.mxu0 %v2284_v6  ;;  %v2310_v7 = vpack.c.bf16 %v441_v0, %v440_v63  ;;  %v155_v18 = vld [vmem:[#allocation2 + $0x278] sm:$0xff]  ;;  %v90_v19 = vld [vmem:[#allocation2 + $0x70] sm:$0xff] }
  0xcc   :  { %1208 = vmatmul.mubr.f32.vlgmr.msra.gmra.mrb[40].mxu0 %v86_v10  ;;  %2316 = vmatprep.subr.bf16.mxu1 %v2284_v6  ;;  %v182_v6 = vld [vmem:[#allocation2 + $0x350] sm:$0xff]  ;;  %v443_v10 = vld [vmem:[#allocation7 + $0x778] sm:$0xff] }
  0xcd   :  { %1313 = vmatmul.mubr.f32.vlgmr.msra.gmra.mrb[48].mxu1 %v88_v12  ;;  %2287 = vmatpush3.bf16.msra.mxu0 %v2286_v11  ;;  %v2312_v12 = vpack.c.bf16 %v459_v5, %v458_v4  ;;  %v106_v23 = vld [vmem:[#allocation2 + $0xf0] sm:$0xff]  ;;  %v139_v29 = vld [vmem:[#allocation2 + $0x1f8] sm:$0xff] }
  0xce   :  { %2324 = vmatpush3.bf16.msra.mxu1 %v2286_v11  ;;  %1212 = vmatprep.mubr.f32.mxu0 %v103_v15  ;;  %v199_v11 = vld [vmem:[#allocation2 + $0x3d8] sm:$0xff]  ;;  %v2314_v15 = vpack.c.bf16 %v443_v10, %v442_v9  ;;  %v170_v24 = vld [vmem:[#allocation2 + $0x2f0] sm:$0xff] }
  0xcf   :  { %1317 = vmatprep.mubr.f32.mxu1 %v105_v17  ;;  %2289 = vmatprep.subr.bf16.mxu0 %v2288_v16  ;;  %v91_v17 = vld [vmem:[#allocation2 + $0x78] sm:$0xff]  ;;  %v186_v28 = vld [vmem:[#allocation2 + $0x370] sm:$0xff] }
  0xd0   :  { %1213 = vmatmul.mubr.f32.gmra.mrb[42].mxu0 %v102_v20  ;;  %2317 = vmatprep.subr.bf16.mxu1 %v2288_v16  ;;  %v200_v16 = vld [vmem:[#allocation2 + $0x3e0] sm:$0xff]  ;;  %v154_v20 = vld [vmem:[#allocation2 + $0x270] sm:$0xff] }
  0xd1   :  { %1318 = vmatmul.mubr.f32.gmra.mrb[50].mxu1 %v104_v22  ;;  %2291 = vmatpush3.bf16.msra.mxu0 %v2290_v21  ;;  %v171_v22 = vld [vmem:[#allocation2 + $0x2f8] sm:$0xff] }
  0xd2   :  { %2325 = vmatpush3.bf16.msra.mxu1 %v2290_v21  ;;  %1217 = vmatprep.mubr.f32.mxu0 %v119_v25  ;;  %v107_v21 = vld [vmem:[#allocation2 + $0xf8] sm:$0xff] }
  0xd3   :  { %1322 = vmatprep.mubr.f32.mxu1 %v121_v27  ;;  %2293 = vmatprep.subr.bf16.mxu0 %v2292_v26  ;;  %v123_v25 = vld [vmem:[#allocation2 + $0x178] sm:$0xff]  ;;  %v122_v27 = vld [vmem:[#allocation2 + $0x170] sm:$0xff] }
  0xd4   :  { %1218 = vmatmul.mubr.f32.gmra.mrb[44].mxu0 %v118_v30  ;;  %2318 = vmatprep.subr.bf16.mxu1 %v2292_v26  ;;  %v187_v26 = vld [vmem:[#allocation2 + $0x378] sm:$0xff] }
  0xd5   :  { %1323 = vmatmul.mubr.f32.gmra.mrb[52].mxu1 %v120_v32  ;;  %2295 = vmatpush3.bf16.msra.mxu0 %v2294_v31  ;;  %v203_v30 = vld [vmem:[#allocation2 + $0x3f8] sm:$0xff]  ;;  %v202_v32 = vld [vmem:[#allocation2 + $0x3f0] sm:$0xff] }
  0xd6   :  { %2326 = vmatpush3.bf16.msra.mxu1 %v2294_v31  ;;  %1222 = vmatprep.mubr.f32.mxu0 %v135_v35  ;;  %v138_v31 = vld [vmem:[#allocation2 + $0x1f0] sm:$0xff] }
  0xd7   :  { %1327 = vmatprep.mubr.f32.mxu1 %v137_v37  ;;  %2297 = vmatprep.subr.bf16.mxu0 %v2296_v36 }
  0xd8   :  { %1223 = vmatmul.mubr.f32.gmra.mrb[46].mxu0 %v134_v40  ;;  %2319 = vmatprep.subr.bf16.mxu1 %v2296_v36 }
  0xd9   :  { %1328 = vmatmul.mubr.f32.gmra.mrb[54].mxu1 %v136_v42  ;;  %2299 = vmatpush3.bf16.msra.mxu0 %v2298_v41 }
  0xda   :  { %2327 = vmatpush3.bf16.msra.mxu1 %v2298_v41  ;;  %1227 = vmatprep.mubr.f32.mxu0 %v151_v45 }
  0xdb   :  { %1332 = vmatprep.mubr.f32.mxu1 %v153_v47  ;;  %2301 = vmatprep.subr.bf16.mxu0 %v2300_v46 }
  0xdc   :  { %1228 = vmatmul.mubr.f32.gmra.mrb[48].mxu0 %v150_v50  ;;  %2320 = vmatprep.subr.bf16.mxu1 %v2300_v46 }
  0xdd   :  { %1333 = vmatmul.mubr.f32.gmra.mrb[56].mxu1 %v152_v52  ;;  %2303 = vmatpush3.bf16.msra.mxu0 %v2302_v51 }
  0xde   :  { %2328 = vmatpush3.bf16.msra.mxu1 %v2302_v51  ;;  %1232 = vmatprep.mubr.f32.mxu0 %v167_v55 }
  0xdf   :  { %1337 = vmatprep.mubr.f32.mxu1 %v169_v57  ;;  %2305 = vmatprep.subr.bf16.mxu0 %v2304_v56 }
  0xe0   :  { %1233 = vmatmul.mubr.f32.gmra.mrb[50].mxu0 %v166_v60  ;;  %2321 = vmatprep.subr.bf16.mxu1 %v2304_v56 }
  0xe1   :  { %1338 = vmatmul.mubr.f32.gmra.mrb[58].mxu1 %v168_v62  ;;  %2307 = vmatpush3.bf16.msra.mxu0 %v2306_v61 }
  0xe2   :  { %2329 = vmatpush3.bf16.msra.mxu1 %v2306_v61  ;;  %1237 = vmatprep.mubr.f32.mxu0 %v183_v1 }
  0xe3   :  { %1342 = vmatprep.mubr.f32.mxu1 %v185_v3  ;;  %2309 = vmatprep.subr.bf16.mxu0 %v2308_v2 }
  0xe4   :  { %1238 = vmatmul.mubr.f32.gmra.mrb[52].mxu0 %v182_v6  ;;  %2322 = vmatprep.subr.bf16.mxu1 %v2308_v2 }
  0xe5   :  { %1343 = vmatmul.mubr.f32.gmra.mrb[60].mxu1 %v184_v8  ;;  %2311 = vmatpush3.bf16.msra.mxu0 %v2310_v7 }
  0xe6   :  { %2330 = vmatpush3.bf16.msra.mxu1 %v2310_v7  ;;  %1242 = vmatprep.mubr.f32.mxu0 %v199_v11 }
  0xe7   :  { %1347 = vmatprep.mubr.f32.mxu1 %v201_v13  ;;  %2313 = vmatprep.subr.bf16.mxu0 %v2312_v12 }
  0xe8   :  { %1243 = vmatmul.mubr.f32.gmra.mrb[54].mxu0 %v198_v14  ;;  %2323 = vmatprep.subr.bf16.mxu1 %v2312_v12 }
  0xe9   :  { %1348 = vmatmul.mubr.f32.gmra.mrb[62].mxu1 %v200_v16  ;;  %2315 = vmatpush3.bf16.msra.mxu0 %v2314_v15 }
  0xea   :  { %2331 = vmatpush3.bf16.msra.mxu1 %v2314_v15  ;;  %1417 = vmatprep.mubr.f32.mxu0 %v91_v17 }
  0xeb   :  { %1437 = vmatprep.mubr.f32.mxu1 %v155_v18 }
  0xec   :  { %1418 = vmatmul.mubr.f32.vlgmr.msra.gmra.mrb[56].mxu0 %v90_v19 }
  0xed   :  { %1438 = vmatmul.mubr.f32.vlgmr.msra.gmra.mrb[64].mxu1 %v154_v20  ;;  %1422 = vmatprep.mubr.f32.mxu0 %v107_v21 }
  0xee   :  { %1442 = vmatprep.mubr.f32.mxu1 %v171_v22 }
  0xf0   :  { %1423 = vmatmul.mubr.f32.gmra.mrb[58].mxu0 %v106_v23 }
  0xf1   :  { %1443 = vmatmul.mubr.f32.gmra.mrb[66].mxu1 %v170_v24  ;;  %1427 = vmatprep.mubr.f32.mxu0 %v123_v25 }
  0xf2   :  { %1447 = vmatprep.mubr.f32.mxu1 %v187_v26 }
  0xf4   :  { %1428 = vmatmul.mubr.f32.gmra.mrb[60].mxu0 %v122_v27 }
  0xf5   :  { %1448 = vmatmul.mubr.f32.gmra.mrb[68].mxu1 %v186_v28  ;;  %1432 = vmatprep.mubr.f32.mxu0 %v139_v29 }
  0xf6   :  { %1452 = vmatprep.mubr.f32.mxu1 %v203_v30 }
  0xf8   :  { %1433 = vmatmul.mubr.f32.gmra.mrb[62].mxu0 %v138_v31 }
  0xf9   :  { %1453 = vmatmul.mubr.f32.gmra.mrb[70].mxu1 %v202_v32 }
 0x13f   :  { %v2016_v33 = vpop.f32.mrb[0].mxu0 }
 0x140   :  { %v1566_v34 = vpop.f32.mrb[0].mxu1  ;;  %v579_v35 = vpop.f32.mrb[1].mxu0 }
 0x141   :  { %v1567_v36 = vpop.f32.mrb[1].mxu1 }
 0x142   :  { %v1568_v37 = vadd.f32 %v1567_v36, %v1566_v34 }
 0x144   :  { %v685_v38 = vadd.f32 %v1568_v37, %v579_v35  ;;  %v1569_v39 = vpop.f32.mrb[2].mxu1 }
 0x145   :  { %v1570_v40 = vpop.f32.mrb[3].mxu1 }
 0x146   :  { %v1571_v41 = vadd.f32 %v1570_v40, %v1569_v39 }
 0x147   :  { %v2019_v42 = vpop.f32.mrb[2].mxu0 }
 0x148   :  { %v690_v43 = vadd.f32 %v2016_v33, %v1571_v41  ;;  %v1572_v44 = vpop.f32.mrb[4].mxu1  ;;  %v589_v45 = vpop.f32.mrb[3].mxu0 }
 0x149   :  { %v1573_v46 = vpop.f32.mrb[5].mxu1 }
 0x14a   :  { %v1574_v47 = vadd.f32 %v1573_v46, %v1572_v44 }
 0x14c   :  { %v695_v48 = vadd.f32 %v1574_v47, %v589_v45  ;;  %v1575_v49 = vpop.f32.mrb[6].mxu1 }
 0x14d   :  { %v1576_v50 = vpop.f32.mrb[7].mxu1 }
 0x14e   :  { %v1577_v51 = vadd.f32 %v1576_v50, %v1575_v49 }
 0x14f   :  { %v2022_v52 = vpop.f32.mrb[4].mxu0 }
 0x150   :  { %v700_v53 = vadd.f32 %v2019_v42, %v1577_v51  ;;  %v1578_v54 = vpop.f32.mrb[8].mxu1  ;;  %v599_v55 = vpop.f32.mrb[5].mxu0 }
 0x151   :  { %v1579_v56 = vpop.f32.mrb[9].mxu1 }
 0x152   :  { %v1580_v57 = vadd.f32 %v1579_v56, %v1578_v54 }
 0x154   :  { %v705_v58 = vadd.f32 %v1580_v57, %v599_v55  ;;  %v1581_v59 = vpop.f32.mrb[10].mxu1 }
 0x155   :  { %v1582_v60 = vpop.f32.mrb[11].mxu1 }
 0x156   :  { %v1583_v61 = vadd.f32 %v1582_v60, %v1581_v59 }
 0x157   :  { %v2025_v62 = vpop.f32.mrb[6].mxu0 }
 0x158   :  { %v710_v63 = vadd.f32 %v2022_v52, %v1583_v61  ;;  %v1584_v0 = vpop.f32.mrb[12].mxu1  ;;  %v609_v1 = vpop.f32.mrb[7].mxu0 }
 0x159   :  { %v1585_v2 = vpop.f32.mrb[13].mxu1 }
 0x15a   :  { %v1586_v3 = vadd.f32 %v1585_v2, %v1584_v0 }
 0x15c   :  { %v715_v4 = vadd.f32 %v1586_v3, %v609_v1  ;;  %v1587_v5 = vpop.f32.mrb[14].mxu1 }
 0x15d   :  { %v1588_v6 = vpop.f32.mrb[15].mxu1 }
 0x15e   :  { %v1589_v7 = vadd.f32 %v1588_v6, %v1587_v5 }
 0x15f   :  { %v1622_v8 = vpop.f32.mrb[8].mxu0 }
 0x160   :  { %v720_v9 = vadd.f32 %v2025_v62, %v1589_v7  ;;  %v1678_v10 = vpop.f32.mrb[16].mxu1  ;;  %v1623_v11 = vpop.f32.mrb[9].mxu0 }
 0x161   :  { %v1624_v12 = vadd.f32 %v1623_v11, %v1622_v8  ;;  %v1679_v13 = vpop.f32.mrb[17].mxu1 }
 0x162   :  { %v1680_v14 = vadd.f32 %v1679_v13, %v1678_v10 }
 0x163   :  { %v790_v15 = vadd.f32 %v1624_v12, %v685_v38  ;;  %v1625_v16 = vpop.f32.mrb[10].mxu0 }
 0x164   :  { %v1681_v17 = vpop.f32.mrb[18].mxu1  ;;  %v1626_v18 = vpop.f32.mrb[11].mxu0 }
 0x165   :  { %v895_v19 = vadd.f32 %v1680_v14, %v790_v15  ;;  %v1627_v20 = vadd.f32 %v1626_v18, %v1625_v16  ;;  %v1682_v21 = vpop.f32.mrb[19].mxu1 }
 0x166   :  { %v1683_v22 = vadd.f32 %v1682_v21, %v1681_v17 }
 0x167   :  { %v795_v23 = vadd.f32 %v1627_v20, %v690_v43  ;;  %v1628_v24 = vpop.f32.mrb[12].mxu0 }
 0x168   :  { %v1684_v25 = vpop.f32.mrb[20].mxu1  ;;  %v1629_v26 = vpop.f32.mrb[13].mxu0 }
 0x169   :  { %v900_v27 = vadd.f32 %v1683_v22, %v795_v23  ;;  %v1630_v28 = vadd.f32 %v1629_v26, %v1628_v24  ;;  %v1685_v29 = vpop.f32.mrb[21].mxu1 }
 0x16a   :  { %v1686_v30 = vadd.f32 %v1685_v29, %v1684_v25 }
 0x16b   :  { %v800_v31 = vadd.f32 %v1630_v28, %v695_v48  ;;  %v1631_v32 = vpop.f32.mrb[14].mxu0 }
 0x16c   :  { %v1687_v33 = vpop.f32.mrb[22].mxu1  ;;  %v1632_v34 = vpop.f32.mrb[15].mxu0 }
 0x16d   :  { %v905_v35 = vadd.f32 %v1686_v30, %v800_v31  ;;  %v1633_v36 = vadd.f32 %v1632_v34, %v1631_v32  ;;  %v1688_v37 = vpop.f32.mrb[23].mxu1 }
 0x16e   :  { %v1689_v38 = vadd.f32 %v1688_v37, %v1687_v33 }
 0x16f   :  { %v805_v39 = vadd.f32 %v1633_v36, %v700_v53  ;;  %v1634_v40 = vpop.f32.mrb[16].mxu0 }
 0x170   :  { %v1690_v41 = vpop.f32.mrb[24].mxu1  ;;  %v1635_v42 = vpop.f32.mrb[17].mxu0 }
 0x171   :  { %v910_v43 = vadd.f32 %v1689_v38, %v805_v39  ;;  %v1636_v44 = vadd.f32 %v1635_v42, %v1634_v40  ;;  %v1691_v45 = vpop.f32.mrb[25].mxu1 }
 0x172   :  { %v1692_v46 = vadd.f32 %v1691_v45, %v1690_v41 }
 0x173   :  { %v810_v47 = vadd.f32 %v1636_v44, %v705_v58  ;;  %v1637_v49 = vpop.f32.mrb[18].mxu0 }
 0x174   :  { %v1693_v50 = vpop.f32.mrb[26].mxu1  ;;  %v1638_v51 = vpop.f32.mrb[19].mxu0 }
 0x175   :  { %v915_v48 = vadd.f32 %v1692_v46, %v810_v47  ;;  %v1639_v52 = vadd.f32 %v1638_v51, %v1637_v49  ;;  %v1694_v54 = vpop.f32.mrb[27].mxu1 }
 0x176   :  { %v1695_v55 = vadd.f32 %v1694_v54, %v1693_v50 }
 0x177   :  { %v815_v56 = vadd.f32 %v1639_v52, %v710_v63  ;;  %v1640_v57 = vpop.f32.mrb[20].mxu0 }
 0x178   :  { %v1696_v59 = vpop.f32.mrb[28].mxu1  ;;  %v1641_v60 = vpop.f32.mrb[21].mxu0 }
 0x179   :  { %v920_v53 = vadd.f32 %v1695_v55, %v815_v56  ;;  %v1642_v61 = vadd.f32 %v1641_v60, %v1640_v57  ;;  %v1697_v62 = vpop.f32.mrb[29].mxu1 }
 0x17a   :  { %v1698_v0 = vadd.f32 %v1697_v62, %v1696_v59 }
 0x17b   :  { %v820_v1 = vadd.f32 %v1642_v61, %v715_v4  ;;  %v1643_v2 = vpop.f32.mrb[22].mxu0 }
 0x17c   :  { %v1699_v3 = vpop.f32.mrb[30].mxu1  ;;  %v1644_v5 = vpop.f32.mrb[23].mxu0 }
 0x17d   :  { %v925_v58 = vadd.f32 %v1698_v0, %v820_v1  ;;  %v1645_v6 = vadd.f32 %v1644_v5, %v1643_v2  ;;  %v1700_v7 = vpop.f32.mrb[31].mxu1 }
 0x17e   :  { %v1701_v8 = vadd.f32 %v1700_v7, %v1699_v3 }
 0x17f   :  { %v825_v10 = vadd.f32 %v1645_v6, %v720_v9  ;;  %v1734_v11 = vpop.f32.mrb[24].mxu0 }
 0x180   :  { %v1790_v12 = vpop.f32.mrb[32].mxu1  ;;  %v1735_v13 = vpop.f32.mrb[25].mxu0 }
 0x181   :  { %v930_v63 = vadd.f32 %v1701_v8, %v825_v10  ;;  %v1736_v14 = vadd.f32 %v1735_v13, %v1734_v11  ;;  %v1791_v15 = vpop.f32.mrb[33].mxu1 }
 0x182   :  { %v1792_v16 = vadd.f32 %v1791_v15, %v1790_v12 }
 0x183   :  { %v1000_v17 = vadd.f32 %v1736_v14, %v895_v19  ;;  %v1737_v18 = vpop.f32.mrb[26].mxu0 }
 0x184   :  { %v1793_v20 = vpop.f32.mrb[34].mxu1  ;;  %v1738_v21 = vpop.f32.mrb[27].mxu0 }
 0x185   :  { %v1105_v4 = vadd.f32 %v1792_v16, %v1000_v17  ;;  %v1739_v22 = vadd.f32 %v1738_v21, %v1737_v18  ;;  %v1794_v23 = vpop.f32.mrb[35].mxu1 }
 0x186   :  { %v1795_v24 = vadd.f32 %v1794_v23, %v1793_v20 }
 0x187   :  { %v1005_v25 = vadd.f32 %v1739_v22, %v900_v27  ;;  %v1740_v26 = vpop.f32.mrb[28].mxu0 }
 0x188   :  { %v1796_v28 = vpop.f32.mrb[36].mxu1  ;;  %v1741_v29 = vpop.f32.mrb[29].mxu0 }
 0x189   :  { %v1110_v9 = vadd.f32 %v1795_v24, %v1005_v25  ;;  %v1742_v30 = vadd.f32 %v1741_v29, %v1740_v26  ;;  %v1797_v31 = vpop.f32.mrb[37].mxu1 }
 0x18a   :  { %v1798_v32 = vadd.f32 %v1797_v31, %v1796_v28 }
 0x18b   :  { %v1010_v33 = vadd.f32 %v1742_v30, %v905_v35  ;;  %v1743_v34 = vpop.f32.mrb[30].mxu0 }
 0x18c   :  { %v1799_v36 = vpop.f32.mrb[38].mxu1  ;;  %v1744_v37 = vpop.f32.mrb[31].mxu0 }
 0x18d   :  { %v1115_v19 = vadd.f32 %v1798_v32, %v1010_v33  ;;  %v1745_v38 = vadd.f32 %v1744_v37, %v1743_v34  ;;  %v1800_v39 = vpop.f32.mrb[39].mxu1 }
 0x18e   :  { %v1801_v40 = vadd.f32 %v1800_v39, %v1799_v36 }
 0x18f   :  { %v1015_v41 = vadd.f32 %v1745_v38, %v910_v43  ;;  %v1746_v42 = vpop.f32.mrb[32].mxu0 }
 0x190   :  { %v1802_v44 = vpop.f32.mrb[40].mxu1  ;;  %v1747_v45 = vpop.f32.mrb[33].mxu0 }
 0x191   :  { %v1120_v27 = vadd.f32 %v1801_v40, %v1015_v41  ;;  %v1748_v46 = vadd.f32 %v1747_v45, %v1746_v42  ;;  %v1803_v47 = vpop.f32.mrb[41].mxu1 }
 0x192   :  { %v1804_v49 = vadd.f32 %v1803_v47, %v1802_v44 }
 0x193   :  { %v1020_v50 = vadd.f32 %v1748_v46, %v915_v48  ;;  %v1749_v51 = vpop.f32.mrb[34].mxu0 }
 0x194   :  { %v1805_v52 = vpop.f32.mrb[42].mxu1  ;;  %v1750_v54 = vpop.f32.mrb[35].mxu0 }
 0x195   :  { %v1125_v35 = vadd.f32 %v1804_v49, %v1020_v50  ;;  %v1751_v55 = vadd.f32 %v1750_v54, %v1749_v51  ;;  %v1806_v56 = vpop.f32.mrb[43].mxu1 }
 0x196   :  { %v1807_v57 = vadd.f32 %v1806_v56, %v1805_v52 }
 0x197   :  { %v1025_v59 = vadd.f32 %v1751_v55, %v920_v53  ;;  %v1752_v60 = vpop.f32.mrb[36].mxu0 }
 0x198   :  { %v1808_v61 = vpop.f32.mrb[44].mxu1  ;;  %v1753_v62 = vpop.f32.mrb[37].mxu0 }
 0x199   :  { %v1130_v43 = vadd.f32 %v1807_v57, %v1025_v59  ;;  %v1754_v0 = vadd.f32 %v1753_v62, %v1752_v60  ;;  %v1809_v1 = vpop.f32.mrb[45].mxu1 }
 0x19a   :  { %v1810_v2 = vadd.f32 %v1809_v1, %v1808_v61 }
 0x19b   :  { %v1030_v3 = vadd.f32 %v1754_v0, %v925_v58  ;;  %v1755_v5 = vpop.f32.mrb[38].mxu0 }
 0x19c   :  { %v1811_v6 = vpop.f32.mrb[46].mxu1  ;;  %v1756_v7 = vpop.f32.mrb[39].mxu0 }
 0x19d   :  { %v1135_v48 = vadd.f32 %v1810_v2, %v1030_v3  ;;  %v1757_v8 = vadd.f32 %v1756_v7, %v1755_v5  ;;  %v1812_v10 = vpop.f32.mrb[47].mxu1 }
 0x19e   :  { %v1813_v11 = vadd.f32 %v1812_v10, %v1811_v6 }
 0x19f   :  { %v1035_v12 = vadd.f32 %v1757_v8, %v930_v63  ;;  %v1846_v13 = vpop.f32.mrb[40].mxu0 }
 0x1a0   :  { %v1902_v14 = vpop.f32.mrb[48].mxu1  ;;  %v1847_v15 = vpop.f32.mrb[41].mxu0 }
 0x1a1   :  { %v1140_v53 = vadd.f32 %v1813_v11, %v1035_v12  ;;  %v1848_v16 = vadd.f32 %v1847_v15, %v1846_v13  ;;  %v1903_v17 = vpop.f32.mrb[49].mxu1 }
 0x1a2   :  { %v1904_v18 = vadd.f32 %v1903_v17, %v1902_v14 }
 0x1a3   :  { %v1210_v20 = vadd.f32 %v1848_v16, %v1105_v4  ;;  %v1849_v21 = vpop.f32.mrb[42].mxu0 }
 0x1a4   :  { %v1905_v22 = vpop.f32.mrb[50].mxu1  ;;  %v1850_v23 = vpop.f32.mrb[43].mxu0 }
 0x1a5   :  { %v1315_v58 = vadd.f32 %v1904_v18, %v1210_v20  ;;  %v1851_v24 = vadd.f32 %v1850_v23, %v1849_v21  ;;  %v1906_v25 = vpop.f32.mrb[51].mxu1  ;;  %v1509_v21 = vld [vmem:[%s2603_s4] ss:$0 sm:$0xff]  ;;  %s2467_s4 = smov [#allocation10]  }
 0x1a6   :  { %v1907_v26 = vadd.f32 %v1906_v25, %v1905_v22  ;;  %s1486_s18 = sshll.u32 %s2467_s4, 4  ;;  %s1487_s18 = int_to_ptr.vmem [resolvable:$true] %s1486_s18 }
 0x1a7   :  { %v1215_v28 = vadd.f32 %v1851_v24, %v1110_v9  ;;  %v1852_v29 = vpop.f32.mrb[44].mxu0  ;;  %s2429_s19 = scalar_lea.vmem %s1487_s18, 1024  ;;  %p2434_p5 = scmp.lt.s32.totalorder %s1487_s18, %s1487_s18 }
 0x1a8   :  { %v1908_v30 = vpop.f32.mrb[52].mxu1  ;;  %v1853_v31 = vpop.f32.mrb[45].mxu0  ;;  %p2430_p4 = scmp.ne.s32.totalorder %s1487_s18, %s2429_s19  ;;  %p2435_p6 = scmp.lt.s32.totalorder %s2429_s19, %s2429_s19 }
 0x1a9   :  { %v2572_v63 = vadd.f32 %v1907_v26, %v1215_v28  ;;  %v1854_v32 = vadd.f32 %v1853_v31, %v1852_v29  ;;  %v1909_v33 = vpop.f32.mrb[53].mxu1 }
 0x1aa   :  { %v1910_v34 = vadd.f32 %v1909_v33, %v1908_v30  ;;  %p2436_p7 = por %p2435_p6, %p2434_p5 }
 0x1ab   :  { %v1220_v36 = vadd.f32 %v1854_v32, %v1115_v19  ;;  %v1855_v37 = vpop.f32.mrb[46].mxu0 }
 0x1ac   :  { %v1911_v38 = vpop.f32.mrb[54].mxu1  ;;  %v1856_v4 = vpop.f32.mrb[47].mxu0  ;;  %p2437_p8 = pnand %p2436_p7, %p2430_p4 }
 0x1ad   :  { %v2574_v39 = vadd.f32 %v1910_v34, %v1220_v36  ;;  %v1857_v40 = vadd.f32 %v1856_v4, %v1855_v37  ;;  %v1912_v41 = vpop.f32.mrb[55].mxu1 }
 0x1ae   :  { %v1913_v42 = vadd.f32 %v1912_v41, %v1911_v38 }
 0x1af   :  { %v1225_v44 = vadd.f32 %v1857_v40, %v1120_v27  ;;  %v1858_v45 = vpop.f32.mrb[48].mxu0 }
 0x1b0   :  { %v1914_v9 = vpop.f32.mrb[56].mxu1  ;;  %v1859_v46 = vpop.f32.mrb[49].mxu0 }
 0x1b1   :  { %v2576_v47 = vadd.f32 %v1913_v42, %v1225_v44  ;;  %v1860_v49 = vadd.f32 %v1859_v46, %v1858_v45  ;;  %v1915_v50 = vpop.f32.mrb[57].mxu1 }
 0x1b2   :  { %v1916_v51 = vadd.f32 %v1915_v50, %v1914_v9 }
 0x1b3   :  { %v1230_v52 = vadd.f32 %v1860_v49, %v1125_v35  ;;  %v1861_v54 = vpop.f32.mrb[50].mxu0 }
 0x1b4   :  { %v1917_v19 = vpop.f32.mrb[58].mxu1  ;;  %v1862_v55 = vpop.f32.mrb[51].mxu0 }
 0x1b5   :  { %v1335_v56 = vadd.f32 %v1916_v51, %v1230_v52  ;;  %v1863_v57 = vadd.f32 %v1862_v55, %v1861_v54  ;;  %v1918_v59 = vpop.f32.mrb[59].mxu1 }
 0x1b6   :  { %v1919_v60 = vadd.f32 %v1918_v59, %v1917_v19 }
 0x1b7   :  { %v1235_v61 = vadd.f32 %v1863_v57, %v1130_v43  ;;  %v1864_v62 = vpop.f32.mrb[52].mxu0 }
 0x1b8   :  { %v1920_v0 = vpop.f32.mrb[60].mxu1  ;;  %v1865_v27 = vpop.f32.mrb[53].mxu0 }
 0x1b9   :  { %v1340_v1 = vadd.f32 %v1919_v60, %v1235_v61  ;;  %v1866_v2 = vadd.f32 %v1865_v27, %v1864_v62  ;;  %v1921_v3 = vpop.f32.mrb[61].mxu1 }
 0x1ba   :  { %v1922_v5 = vadd.f32 %v1921_v3, %v1920_v0 }
 0x1bb   :  { %v1240_v6 = vadd.f32 %v1866_v2, %v1135_v48  ;;  %v1867_v7 = vpop.f32.mrb[54].mxu0 }
 0x1bc   :  { %v1923_v8 = vpop.f32.mrb[62].mxu1  ;;  %v1868_v10 = vpop.f32.mrb[55].mxu0 }
 0x1bd   :  { %v1345_v35 = vadd.f32 %v1922_v5, %v1240_v6  ;;  %v1869_v11 = vadd.f32 %v1868_v10, %v1867_v7  ;;  %v1924_v12 = vpop.f32.mrb[63].mxu1 }
 0x1be   :  { %v1925_v13 = vadd.f32 %v1924_v12, %v1923_v8 }
 0x1bf   :  { %v1245_v14 = vadd.f32 %v1869_v11, %v1140_v53  ;;  %v1958_v15 = vpop.f32.mrb[56].mxu0 }
 0x1c0   :  { %v1970_v16 = vpop.f32.mrb[64].mxu1  ;;  %v1959_v17 = vpop.f32.mrb[57].mxu0 }
 0x1c1   :  { %v1350_v43 = vadd.f32 %v1925_v13, %v1245_v14  ;;  %v1960_v18 = vadd.f32 %v1959_v17, %v1958_v15  ;;  %v1971_v20 = vpop.f32.mrb[65].mxu1 }
 0x1c2   :  { %v1972_v22 = vadd.f32 %v1971_v20, %v1970_v16 }
 0x1c3   :  { %v1420_v48 = vadd.f32 %v1960_v18, %v1315_v58  ;;  %v1961_v23 = vpop.f32.mrb[58].mxu0 }
 0x1c4   :  { %v1440_v24 = vadd.f32 %v1972_v22, %v1335_v56  ;;  %v1973_v25 = vpop.f32.mrb[66].mxu1  ;;  %v1962_v26 = vpop.f32.mrb[59].mxu0 }
 0x1c5   :  { %v1465_v28 = vadd.f32 %v1509_v21, %v1420_v48  ;;  %v1963_v29 = vadd.f32 %v1962_v26, %v1961_v23  ;;  %v1974_v30 = vpop.f32.mrb[67].mxu1 }
 0x1c6   :  { %v1469_v53 = vadd.f32 %v1509_v21, %v1440_v24  ;;  %v1975_v31 = vadd.f32 %v1974_v30, %v1973_v25 }
 0x1c7   :  { %1473 = vst [vmem:[#allocation10] sm:$0xff] %v1465_v28  ;;  %v1425_v32 = vadd.f32 %v1963_v29, %v2572_v63  ;;  %v1964_v33 = vpop.f32.mrb[60].mxu0 }
 0x1c8   :  { %1477 = vst [vmem:[#allocation10 + $0x20] sm:$0xff] %v1469_v53  ;;  %v1445_v34 = vadd.f32 %v1975_v31, %v1340_v1  ;;  %v1976_v36 = vpop.f32.mrb[68].mxu1  ;;  %v1965_v37 = vpop.f32.mrb[61].mxu0 }
 0x1c9   :  { %v1466_v38 = vadd.f32 %v1509_v21, %v1425_v32  ;;  %v1966_v4 = vadd.f32 %v1965_v37, %v1964_v33  ;;  %v1977_v58 = vpop.f32.mrb[69].mxu1 }
 0x1ca   :  { %v1470_v40 = vadd.f32 %v1509_v21, %v1445_v34  ;;  %v1978_v41 = vadd.f32 %v1977_v58, %v1976_v36 }
 0x1cb   :  { %1474 = vst [vmem:[#allocation10 + $0x8] sm:$0xff] %v1466_v38  ;;  %v1430_v42 = vadd.f32 %v1966_v4, %v2574_v39  ;;  %v1967_v44 = vpop.f32.mrb[62].mxu0 }
 0x1cc   :  { %1478 = vst [vmem:[#allocation10 + $0x28] sm:$0xff] %v1470_v40  ;;  %v1450_v45 = vadd.f32 %v1978_v41, %v1345_v35  ;;  %v1979_v9 = vpop.f32.mrb[70].mxu1  ;;  %v1968_v46 = vpop.f32.mrb[63].mxu0 }
 0x1cd   :  { %v1467_v49 = vadd.f32 %v1509_v21, %v1430_v42  ;;  %v1969_v63 = vadd.f32 %v1968_v46, %v1967_v44  ;;  %v1980_v50 = vpop.f32.mrb[71].mxu1 }
 0x1ce   :  { %v1471_v51 = vadd.f32 %v1509_v21, %v1450_v45  ;;  %v1981_v52 = vadd.f32 %v1980_v50, %v1979_v9 }
 0x1cf   :  { %1475 = vst [vmem:[#allocation10 + $0x10] sm:$0xff] %v1467_v49  ;;  %v1435_v54 = vadd.f32 %v1969_v63, %v2576_v47 }
 0x1d0   :  { %1479 = vst [vmem:[#allocation10 + $0x30] sm:$0xff] %v1471_v51  ;;  %v1455_v19 = vadd.f32 %v1981_v52, %v1350_v43 }
 0x1d1   :  { %v1468_v55 = vadd.f32 %v1509_v21, %v1435_v54 }
 0x1d2   :  { %v1472_v56 = vadd.f32 %v1509_v21, %v1455_v19 }
 0x1d3   :  { %1476 = vst [vmem:[#allocation10 + $0x18] sm:$0xff] %v1468_v55 }
 0x1d4   :  { %1480 = vst [vmem:[#allocation10 + $0x38] sm:$0xff] %v1472_v56 }
 0x1d5   :  { %2440 = shalt.err (!%p2437_p8)
}
 0x1d6   :  { %s2441_s22 = scalar_lea.hbm %s2604_s5, 1024 }
 0x1d7   :  { %p2442_p9 = scmp.ne.s32.totalorder %s2604_s5, %s2441_s22  ;;  %p2445_p10 = scmp.lt.u32.totalorder %s2441_s22, %s2604_s5 }
 0x1d9   :  { %p2447_p11 = pnand %p2445_p10, %p2442_p9 }
 0x1db   :  { %2450 = shalt.err (!%p2447_p11)
}
 0x1dc   :  { %1492 = dma.vmem_to_hbm [thread:$0]  %s1487_s18, 1024, %s2604_s5, [#allocation4], %s2460_s28, %s2460_s28, %s2461_s29  }
 0x1dd   :  { %2457 = dma.done.wait [#allocation4], 1024  }
 0x1de   :  { %2458 = vsyncadd [#allocation4], 4294966272 }
 0x1df   :  { %1496 = vsyncpa [#allocation3], 1 }
 0x1e0   :  { %1497 = vsyncpa [#allocation6], 1 }
 0x1e1   :  { %1498 = vsyncpa [#allocation9], 1 }
 0x1e2   :  { %1499 = vsyncpa [#allocation4], 1 }

</bundles_post_ra>
